<compile_context>
chip_gen: v6e
topology: v6e:2x2x1
jax: 0.10.0
libtpu: 0.0.40
codegen_flags: <defaults>
</compile_context>

<pallas_src>
import jax
import jax.numpy as jnp
from jax.experimental import pallas as pl
from jax.experimental.pallas import tpu as pltpu


def cvae_decoder_kernel(z_ref, cond_ref, w1_ref, b1_ref, w2_ref, b2_ref, out_ref):
    # z_ref    : [bb, K_pad]   f32  (z in lanes [0, latent_dim), zeros elsewhere)
    # cond_ref : [bb, 1]       i32  (condition index already offset by latent_dim)
    # w1_ref   : [K_pad, hid]  f32  (rows >= latent_dim + n_conds are zero)
    # w2_ref   : [hid, out_pad] bf16
    zz = z_ref[...]
    lane = jax.lax.broadcasted_iota(jnp.int32, zz.shape, 1)
    # Fused one_hot + concat: set lane (latent_dim + cond) to 1.0 on the padded tile.
    zz = zz + (lane == cond_ref[...]).astype(zz.dtype)

    # ---- layer1 on the MXU (K padded to 128) + ReLU -------------------------
    h = jnp.dot(zz, w1_ref[...], preferred_element_type=jnp.float32) + b1_ref[...]
    h = jnp.maximum(h, 0.0)

    # ---- layer2 on the MXU: bf16 operands, f32 accumulation -----------------
    logits = jnp.dot(h.astype(w2_ref.dtype), w2_ref[...],
                     preferred_element_type=jnp.float32) + b2_ref[...]

    # Sigmoid in f32 (safe on v5e, no bf16 EUP there); bf16 store halves writeback.
    out_ref[...] = jax.nn.sigmoid(logits).astype(out_ref.dtype)


def cvae_decoder_forward(z, cond, kernel_params, output_dim, block_b=512):
    """Fused CVAE-decoder forward. Returns [B, output_dim] bfloat16."""
    w1p, b1, w2p, b2p = kernel_params
    B, latent_dim = z.shape
    k_pad, hid = w1p.shape
    out_pad = w2p.shape[1]

    # Batch block: large enough to amortize per-step overhead, but keep >= 2 grid
    # steps for small batches so both v7x TensorCores get work.
    b8 = ((B + 7) // 8) * 8
    if b8 <= 8:
        bb = 8
    elif b8 <= 2 * block_b:
        bb = ((b8 // 2 + 7) // 8) * 8
    else:
        bb = block_b
    nb = -(-B // bb)
    B_pad = nb * bb

    # Pad z to K_pad lanes (one-hot lanes stay zero; the kernel adds the one-hot).
    z_pad = jnp.pad(z.astype(jnp.float32),
                    ((0, B_pad - B), (0, k_pad - latent_dim)))
    cond2d = (cond.astype(jnp.int32) + latent_dim).reshape(-1, 1)
    cond2d = jnp.pad(cond2d, ((0, B_pad - B), (0, 0)))

    cost = pl.CostEstimate(
        flops=2 * B_pad * hid * (k_pad + out_pad),
        transcendentals=B_pad * out_pad,                       # sigmoid exp
        bytes_accessed=(z_pad.size * 4 + cond2d.size * 4
                        + w1p.size * 4 + b1.size * 4
                        + w2p.size * 2 + b2p.size * 4
                        + B_pad * out_pad * 2),
    )

    def pinned(shape):
        # Constant-index weight blocks stay VMEM-resident across grid steps.
        return pl.BlockSpec(shape, lambda i: (0, 0))

    out = pl.pallas_call(
        cvae_decoder_kernel,
        out_shape=jax.ShapeDtypeStruct((B_pad, out_pad), jnp.bfloat16),
        grid=(nb,),
        in_specs=[
            pl.BlockSpec((bb, k_pad), lambda i: (i, 0)),       # z (K-padded)
            pl.BlockSpec((bb, 1), lambda i: (i, 0)),           # cond (offset)
            pinned((k_pad, hid)),                              # W1 (K-padded)
            pinned((1, hid)),                                  # b1
            pinned((hid, out_pad)),                            # W2 (bf16)
            pinned((1, out_pad)),                              # b2
        ],
        out_specs=pl.BlockSpec((bb, out_pad), lambda i: (i, 0)),
        compiler_params=pltpu.CompilerParams(
            dimension_semantics=("parallel",),
            vmem_limit_bytes=32 * 1024 * 1024),                # covers v5e default
        cost_estimate=cost,
    )(z_pad, cond2d, w1p, b1, w2p, b2p)

    return out[:B, :output_dim]


def init_params(key, latent_dim, n_conds, hid_dim, output_dim):
    """f32 params mimicking nn.Linear init, stored transposed as [in, out]."""
    k1, k2, k3, k4 = jax.random.split(key, 4)
    in1 = latent_dim + n_conds
    lim1 = 1.0 / (in1 ** 0.5)
    lim2 = 1.0 / (hid_dim ** 0.5)
    w1 = jax.random.uniform(k1, (in1, hid_dim), jnp.float32, -lim1, lim1)
    b1 = jax.random.uniform(k2, (1, hid_dim), jnp.float32, -lim1, lim1)
    w2 = jax.random.uniform(k3, (hid_dim, output_dim), jnp.float32, -lim2, lim2)
    b2 = jax.random.uniform(k4, (1, output_dim), jnp.float32, -lim2, lim2)
    return w1, b1, w2, b2


def pack_params(params, latent_dim, n_conds):
    """Pad W1 rows to K=128, pad W2/b2 to a lane-dense width, store W2 in bf16."""
    w1, b1, w2, b2 = params
    output_dim = w2.shape[1]
    k_in = latent_dim + n_conds
    k_pad = ((k_in + 127) // 128) * 128            # 12  -> 128
    out_pad = ((output_dim + 127) // 128) * 128    # 784 -> 896 (7*128, lane-dense)
    w1p = jnp.pad(w1, ((0, k_pad - k_in), (0, 0)))
    w2p = jnp.pad(w2, ((0, 0), (0, out_pad - output_dim))).astype(jnp.bfloat16)
    b2p = jnp.pad(b2, ((0, 0), (0, out_pad - output_dim)))
    return w1p, b1, w2p, b2p


if __name__ == "__main__":
    latent_dim, n_conds, hid_dim, output_dim = 2, 10, 512, 28 * 28
    batch = 16

    key = jax.random.PRNGKey(0)
    kz, kc, kp = jax.random.split(key, 3)

    z = jax.random.normal(kz, (batch, latent_dim), dtype=jnp.float32)
    cond = jax.random.randint(kc, (batch,), 0, n_conds, dtype=jnp.int32)

    params = init_params(kp, latent_dim, n_conds, hid_dim, output_dim)
    kernel_params = pack_params(params, latent_dim, n_conds)

    out = cvae_decoder_forward(z, cond, kernel_params, output_dim)
    out = jax.block_until_ready(out)

    # Full-f32 reference (matches the PyTorch module's math).
    w1, b1, w2, b2 = params
    yy = jax.nn.one_hot(cond, n_conds, dtype=jnp.float32)
    zz = jnp.concatenate([z, yy], axis=1)
    ref = jax.nn.sigmoid(jnp.maximum(zz @ w1 + b1, 0.0) @ w2 + b2)

    assert out.shape == (batch, output_dim)
    assert out.dtype == jnp.bfloat16
    # W2 is bf16 in the kernel and the output is stored bf16 -> relaxed tolerance.
    err = float(jnp.max(jnp.abs(out.astype(jnp.float32) - ref)))
    assert err < 2e-2, err

    print("KERNEL_OK")
</pallas_src>

<mosaic_0001>
module attributes {stable_mosaic.version = 11 : i64} {
  func.func @cvae_decoder_kernel(%arg0: i32, %arg1: memref<8x128xf32, #tpu.memory_space<vmem>>, %arg2: memref<8x1xi32, #tpu.memory_space<vmem>>, %arg3: memref<128x512xf32, #tpu.memory_space<vmem>>, %arg4: memref<1x512xf32, #tpu.memory_space<vmem>>, %arg5: memref<512x896xbf16, #tpu.memory_space<vmem>>, %arg6: memref<1x896xf32, #tpu.memory_space<vmem>>, %arg7: memref<8x896xbf16, #tpu.memory_space<vmem>>) attributes {dimension_semantics = [#tpu.dimension_semantics<parallel>], iteration_bounds = array<i64: 2>, scalar_prefetch = 0 : i64, scratch_operands = 0 : i64, tpu.core_type = #tpu.core_type<tc>, window_params = [{transform_indices = @transform_0, window_bounds = array<i64: 8, 128>}, {transform_indices = @transform_1, window_bounds = array<i64: 8, 1>}, {pipeline_mode = #tpu.pipeline_mode<synchronous>, transform_indices = @transform_2, window_bounds = array<i64: 128, 512>}, {pipeline_mode = #tpu.pipeline_mode<synchronous>, transform_indices = @transform_3, window_bounds = array<i64: 1, 512>}, {pipeline_mode = #tpu.pipeline_mode<synchronous>, transform_indices = @transform_4, window_bounds = array<i64: 512, 896>}, {pipeline_mode = #tpu.pipeline_mode<synchronous>, transform_indices = @transform_5, window_bounds = array<i64: 1, 896>}, {transform_indices = @transform_6, window_bounds = array<i64: 8, 896>}]} {
    %c0 = arith.constant 0 : index
    %c0_0 = arith.constant 0 : index
    %0 = vector.load %arg1[%c0, %c0_0] : memref<8x128xf32, #tpu.memory_space<vmem>>, vector<8x128xf32>
    %1 = tpu.iota {dimensions = array<i32: 1>} : vector<8x128xi32>
    %c0_1 = arith.constant 0 : index
    %c0_2 = arith.constant 0 : index
    %2 = vector.load %arg2[%c0_1, %c0_2] : memref<8x1xi32, #tpu.memory_space<vmem>>, vector<8x1xi32>
    %3 = vector.broadcast %2 : vector<8x1xi32> to vector<8x128xi32>
    %4 = arith.cmpi eq, %1, %3 : vector<8x128xi32>
    %5 = arith.extui %4 : vector<8x128xi1> to vector<8x128xi32>
    %6 = arith.sitofp %5 : vector<8x128xi32> to vector<8x128xf32>
    %7 = arith.addf %0, %6 : vector<8x128xf32>
    %c0_3 = arith.constant 0 : index
    %c0_4 = arith.constant 0 : index
    %8 = vector.load %arg3[%c0_3, %c0_4] : memref<128x512xf32, #tpu.memory_space<vmem>>, vector<128x512xf32>
    %cst = arith.constant dense<0.000000e+00> : vector<8x512xf32>
    %9 = tpu.matmul %7, %8, %cst {dimension_numbers = #tpu.dot_dimension_numbers<[1], [0], [0], [1], [0, 0, 1, 1], [], []>} : vector<8x128xf32>, vector<128x512xf32>, vector<8x512xf32> -> vector<8x512xf32>
    %c0_5 = arith.constant 0 : index
    %c0_6 = arith.constant 0 : index
    %10 = vector.load %arg4[%c0_5, %c0_6] : memref<1x512xf32, #tpu.memory_space<vmem>>, vector<1x512xf32>
    %11 = vector.broadcast %10 : vector<1x512xf32> to vector<8x512xf32>
    %12 = arith.addf %9, %11 : vector<8x512xf32>
    %cst_7 = arith.constant 0.000000e+00 : f32
    %13 = vector.broadcast %cst_7 : f32 to vector<8x512xf32>
    %14 = arith.maximumf %12, %13 : vector<8x512xf32>
    %15 = arith.truncf %14 : vector<8x512xf32> to vector<8x512xbf16>
    %c0_8 = arith.constant 0 : index
    %c0_9 = arith.constant 0 : index
    %16 = vector.load %arg5[%c0_8, %c0_9] : memref<512x896xbf16, #tpu.memory_space<vmem>>, vector<512x896xbf16>
    %cst_10 = arith.constant dense<0.000000e+00> : vector<8x896xf32>
    %17 = tpu.matmul %15, %16, %cst_10 {dimension_numbers = #tpu.dot_dimension_numbers<[1], [0], [0], [1], [0, 0, 1, 1], [], []>} : vector<8x512xbf16>, vector<512x896xbf16>, vector<8x896xf32> -> vector<8x896xf32>
    %c0_11 = arith.constant 0 : index
    %c0_12 = arith.constant 0 : index
    %18 = vector.load %arg6[%c0_11, %c0_12] : memref<1x896xf32, #tpu.memory_space<vmem>>, vector<1x896xf32>
    %19 = vector.broadcast %18 : vector<1x896xf32> to vector<8x896xf32>
    %20 = arith.addf %17, %19 : vector<8x896xf32>
    %21 = arith.negf %20 : vector<8x896xf32>
    %22 = math.exp %21 : vector<8x896xf32>
    %cst_13 = arith.constant 1.000000e+00 : f32
    %23 = vector.broadcast %cst_13 : f32 to vector<8x896xf32>
    %24 = arith.addf %23, %22 : vector<8x896xf32>
    %25 = arith.divf %23, %24 : vector<8x896xf32>
    %26 = arith.truncf %25 : vector<8x896xf32> to vector<8x896xbf16>
    %c0_14 = arith.constant 0 : index
    %c0_15 = arith.constant 0 : index
    %27 = vector.load %arg7[%c0_14, %c0_15] : memref<8x896xbf16, #tpu.memory_space<vmem>>, vector<8x896xbf16>
    tpu.vector_store %arg7[%c0_14, %c0_15], %26 {strides = array<i32>} : memref<8x896xbf16, #tpu.memory_space<vmem>>, vector<8x896xbf16>,
    return
  }
  func.func @transform_0(%arg0: i32) -> (i32, i32) {
    %c0_i32 = arith.constant 0 : i32
    %c0_i32_0 = arith.constant 0 : i32
    return %arg0, %c0_i32 : i32, i32
  }
  func.func @transform_1(%arg0: i32) -> (i32, i32) {
    %c0_i32 = arith.constant 0 : i32
    %c0_i32_0 = arith.constant 0 : i32
    return %arg0, %c0_i32 : i32, i32
  }
  func.func @transform_2(%arg0: i32) -> (i32, i32) {
    %c0_i32 = arith.constant 0 : i32
    %c0_i32_0 = arith.constant 0 : i32
    %c0_i32_1 = arith.constant 0 : i32
    return %c0_i32, %c0_i32_0 : i32, i32
  }
  func.func @transform_3(%arg0: i32) -> (i32, i32) {
    %c0_i32 = arith.constant 0 : i32
    %c0_i32_0 = arith.constant 0 : i32
    %c0_i32_1 = arith.constant 0 : i32
    return %c0_i32, %c0_i32_0 : i32, i32
  }
  func.func @transform_4(%arg0: i32) -> (i32, i32) {
    %c0_i32 = arith.constant 0 : i32
    %c0_i32_0 = arith.constant 0 : i32
    %c0_i32_1 = arith.constant 0 : i32
    return %c0_i32, %c0_i32_0 : i32, i32
  }
  func.func @transform_5(%arg0: i32) -> (i32, i32) {
    %c0_i32 = arith.constant 0 : i32
    %c0_i32_0 = arith.constant 0 : i32
    %c0_i32_1 = arith.constant 0 : i32
    return %c0_i32, %c0_i32_0 : i32, i32
  }
  func.func @transform_6(%arg0: i32) -> (i32, i32) {
    %c0_i32 = arith.constant 0 : i32
    %c0_i32_0 = arith.constant 0 : i32
    return %arg0, %c0_i32 : i32, i32
  }
}

</mosaic_0001>

<bundles_post_ra>
// kernel: tpu_custom_call.1
= control target key start
LH: loop header
LB: loop body
LE: loop exit
PB: predicated region body
PF: predicated region fallthrough
CT: control target
= control target key end

     0   :  { %11 = vsyncpa [#allocation3], 0  ;;  %s3659_s0 = inlined_call_operand.vmem [shape: f32[16,128], index: 0, kind: input, shape index: {}]   ;;  %s3660_s1 = inlined_call_operand.vmem [shape: s32[16,1], index: 1, kind: input, shape index: {}]   ;;  %s3661_s2 = inlined_call_operand.hbm [shape: f32[128,512], index: 2, kind: input, shape index: {}]   ;;  %s3662_s3 = inlined_call_operand.hbm [shape: f32[1,512], index: 3, kind: input, shape index: {}]   ;;  %s3663_s4 = inlined_call_operand.hbm [shape: bf16[512,896], index: 4, kind: input, shape index: {}]   ;;  %s3664_s5 = inlined_call_operand.vmem [shape: f32[1,896], index: 5, kind: input, shape index: {}]   ;;  %s3665_s6 = inlined_call_operand.hbm [shape: bf16[16,896], index: 6, kind: output, shape index: {}]  }
   0x1   :  { %12 = vsyncpa [#allocation6], 0 }
   0x2   :  { %13 = vsyncpa [#allocation4], 0 }
   0x3   :  { %15 = vsyncpa [#allocation4 + $0x1], 0  ;;  %s3436_s21 = smov 0   ;;  %s3438_s22 = smov 0  }
   0x4   :  { %s3440_s23 = smov 0   ;;  %s3442_s24 = smov 0  }
   0x5 LB: > { %s3457_s25 = sadd.s32 4294967295, %s3389_s24   ;;  %s2517_s26 = sadd.s32 4294967294, %s3389_s24   ;;  %s3389_s24 = sphi %s3442_s24, %s3683_s24   ;;  %s3385_s23 = sphi %s3440_s23, %s3682_s23   ;;  %s3381_s22 = sphi %s3438_s22, %s3681_s22   ;;  %s3377_s21 = sphi %s3436_s21, %s3680_s21  }
   0x6   : > { %s3461_s27 = sadd.s32 1, %s3389_s24   ;;  %s164_s28 = sadd.s32 1, %s3385_s23 }
   0x7   : > { %s161_s29 = ssub.s32 %s3389_s24, %s3461_s27  ;;  %p174_p0 = scmp.ne.s32.totalorder %s3385_s23, %s3381_s22 }
   0x8   : > { %p162_p1 = scmp.eq.s32.totalorder %s161_s29, 0  ;;  %p175_p2 = scmp.eq.s32.totalorder %s3457_s25, 1 }
   0x9   : > { %p180_p3 = scmp.ne.s32.totalorder %s3381_s22, %s3377_s21  ;;  %p181_p4 = scmp.eq.s32.totalorder %s2517_s26, 1 }
   0xa   : > { %s3472_s30 = scalar_select %p162_p1, %s3385_s23, %s164_s28  }
   0xb   : > { %p3474_p5 = por %p175_p2, %p174_p0  ;;  %p3478_p6 = por %p181_p4, %p180_p3 }
   0xc   : > { %p2518_p7 = scmp.ge.s32.totalorder %s3389_s24, 1  ;;  %p188_p8 = scmp.lt.s32.totalorder %s3389_s24, 3 }
   0xd   : > { %s3669_s7 = scalar_select %p3474_p5, 1, 0 }
   0xe   : > { %s3670_s8 = scalar_select %p3478_p6, 1, 0 }
   0xf   : > { %p3666_p9 = scmp.eq.s32.totalorder %s3457_s25, 0  ;;  %p3485_p10 = pnand %p2518_p7, %p188_p8 }
  0x10   : > { %s3391_s10 = smov [#allocation5]   ;;  %s3392_s12 = smov [#allocation2]  }
  0x11   : > { %s3671_s9 = scalar_select %p3485_p10, 1, 0 }
  0x12   : > { %s214_s11 = sshll.u32 %s3391_s10, 4  ;;  %p2832_p11 = pneg %p3485_p10  ;;  %s215_s11 = int_to_ptr.vmem [resolvable:$true] %s214_s11 }
  0x13   : > { %s200_s13 = sshll.u32 %s3392_s12, 4  ;;  %s3393_s15 = smov [#allocation7]   ;;  %s201_s13 = int_to_ptr.vmem [resolvable:$true] %s200_s13 }
  0x14   : > { %p3493_p12 = pnand %p3666_p9, %p2832_p11  ;;  %s224_s16 = sshll.u32 %s3393_s15, 4  ;;  %s225_s16 = int_to_ptr.vmem [resolvable:$true] %s224_s16 }
  0x15   : > { %s3254_s17 = scalar_lea.vmem %s215_s11, 64  ;;  %p3262_p3 = scmp.lt.s32.totalorder %s215_s11, %s215_s11 }
  0x16   : > { %p3245_p13 = pneg %p3493_p12  ;;  %p3255_p0 = scmp.ne.s32.totalorder %s215_s11, %s3254_s17 }
  0x17   : > { %p3263_p4 = scmp.lt.s32.totalorder %s3254_s17, %s3254_s17 }
  0x18   : > { %p3257_p1 = pnand %p3255_p0, %p3245_p13 }
  0x19   : > { %p3264_p7 = por %p3263_p4, %p3262_p3 }
  0x1a   : > { %p3258_p2 = pneg %p3257_p1 }
  0x1c   : > { %p3265_p8 = pnand %p3264_p7, %p3258_p2 }
  0x1e   : > { %3268 = shalt.err (!%p3265_p8)
}
  0x1f   : > { %2838 = dma.hbm_to_vmem [thread:$0]  (!%p3493_p12), %s3662_s3, 64, %s215_s11, [#allocation6]  }
  0x20   : > { %s3280_s20 = scalar_lea.vmem %s201_s13, 8192  ;;  %p3288_p0 = scmp.lt.s32.totalorder %s201_s13, %s201_s13 }
  0x21   : > { %p3281_p11 = scmp.ne.s32.totalorder %s201_s13, %s3280_s20  ;;  %p3289_p1 = scmp.lt.s32.totalorder %s3280_s20, %s3280_s20 }
  0x23   : > { %p3283_p9 = pnand %p3281_p11, %p3245_p13  ;;  %p3290_p5 = por %p3289_p1, %p3288_p0 }
  0x25   : > { %p3284_p6 = pneg %p3283_p9 }
  0x27   : > { %p3291_p10 = pnand %p3290_p5, %p3284_p6 }
  0x29   : > { %3294 = shalt.err (!%p3291_p10)
}
  0x2a   : > { %s3394_s26 = smov 512   ;;  %s3395_s28 = smov 32  }
  0x2b   : > { %2835 = dma.hbm_to_vmem [thread:$0]  (!%p3493_p12), %s3661_s2, 8192, %s201_s13, [#allocation3], %s3394_s26, %s3394_s26, %s3395_s28  }
  0x2c   : > { %s3306_s11 = scalar_lea.vmem %s225_s16, 28672  ;;  %p3314_p4 = scmp.lt.s32.totalorder %s225_s16, %s225_s16 }
  0x2d   : > { %p3307_p2 = scmp.ne.s32.totalorder %s225_s16, %s3306_s11  ;;  %p3315_p7 = scmp.lt.s32.totalorder %s3306_s11, %s3306_s11 }
  0x2f   : > { %p3309_p9 = pnand %p3307_p2, %p3245_p13  ;;  %p3316_p5 = por %p3315_p7, %p3314_p4 }
  0x31   : > { %p3310_p3 = pneg %p3309_p9 }
  0x33   : > { %p3317_p6 = pnand %p3316_p5, %p3310_p3 }
  0x35   : > { %3320 = shalt.err (!%p3317_p6)
}
  0x36   : > { %s3396_s12 = smov 448   ;;  %s3397_s15 = smov 28  }
  0x37   : > { %2841 = dma.hbm_to_vmem [thread:$0]  (!%p3493_p12), %s3663_s4, 28672, %s225_s16, [#allocation6], %s3396_s12, %s3396_s12, %s3397_s15  }
  0x38   : > { %p3673_p10 = scmp.ne.s32.totalorder %s3671_s9, 0 }
  0x39   : > { %p3674_p8 = scmp.eq.s32.totalorder (!%p3673_p10), %s3457_s25, 0 }
  0x3a   : > { %257 = sbr.rel (%p3673_p10) target bundleno = 812 (0x32c), region = 44 }
  0x3f   : > { %3364 = dma.done.wait (%p3674_p8), [#allocation3], 8192   ;;  %p3675_p13 = pmov %p3674_p8 }
  0x40   : > { %p3676_p11 = pmov %p3674_p8 }
  0x41   : > { %3366 = vsyncadd (%p3675_p13), [#allocation3], 4294959104 }
  0x42   : > { %3368 = dma.done.wait (%p3676_p11), [#allocation6], 28736   ;;  %p3677_p0 = pmov %p3674_p8 }
  0x43   : > { %p298_p1 = scmp.lt.s32.totalorder %s3457_s25, 1  ;;  %v3398_v0 = vmov 0   ;;  %v3399_v1 = vmov 0.0   ;;  %v379_v3 = vld [vmem:[#allocation2 + $0x1e8] sm:$0xff]  ;;  %v381_v4 = vld [vmem:[#allocation2 + $0x1f8] sm:$0xff]  ;;  %v378_v5 = vld [vmem:[#allocation2 + $0x1e0] sm:$0xff] }
  0x44   : > { %3370 = vsyncadd (%p3677_p0), [#allocation6], 4294938560  ;;  %2894 = vset.pattern.permute.xlu0 %v3398_v0  ;;  %468 = vmatprep.mubr.f32.mxu0 %v3399_v1  ;;  %v380_v6 = vld [vmem:[#allocation2 + $0x1f0] sm:$0xff]  ;;  %v375_v7 = vld [vmem:[#allocation2 + $0x1c8] sm:$0xff]  ;;  %s295_s11 = sand.u32 1, %s3381_s22   ;;  %s2817_s17 = smul.u32 448, %s3457_s25 }
  0x45   : > { %s3536_s9 = scalar_select %p298_p1, %s3457_s25, 1  ;;  %539 = vmatprep.mubr.f32.mxu1 %v3399_v1  ;;  %404 = vmatprep.subr.mxu0 %v379_v3  ;;  %v377_v8 = vld [vmem:[#allocation2 + $0x1d8] sm:$0xff]  ;;  %v374_v9 = vld [vmem:[#allocation2 + $0x1c0] sm:$0xff]  ;;  %v376_v10 = vld [vmem:[#allocation2 + $0x1d0] sm:$0xff] }
  0x46   : > { %475 = vmatprep.subr.mxu1 %v381_v4  ;;  %405 = vmatpush1.msra.mxu0 %v378_v5  ;;  %v371_v11 = vld [vmem:[#allocation2 + $0x1a8] sm:$0xff]  ;;  %v373_v12 = vld [vmem:[#allocation2 + $0x1b8] sm:$0xff]  ;;  %v370_v13 = vld [vmem:[#allocation2 + $0x1a0] sm:$0xff]  ;;  %s2816_s12 = smul.u32 28, %s295_s11  ;;  %s2413_s14 = scalar_lea.hbm %s3665_s6, %s2817_s17 }
  0x47   : > { %s2527_s13 = sshll.u32 %s3536_s9, 3  ;;  %476 = vmatpush1.msra.mxu1 %v380_v6  ;;  %406 = vmatprep.subr.mxu0 %v375_v7  ;;  %v372_v14 = vld [vmem:[#allocation2 + $0x1b0] sm:$0xff]  ;;  %v367_v15 = vld [vmem:[#allocation2 + $0x188] sm:$0xff]  ;;  %v369_v16 = vld [vmem:[#allocation2 + $0x198] sm:$0xff]  ;;  %v308_v6 = vlaneseq  ;;  %s2401_s16 = scalar_lea.sflag [#allocation4], %s295_s11 }
  0x48   : > { %s305_s19 = scalar_lea.vmem %s3660_s1, %s2527_s13  ;;  %477 = vmatprep.subr.mxu1 %v377_v8  ;;  %407 = vmatpush1.msra.mxu0 %v374_v9  ;;  %v366_v17 = vld [vmem:[#allocation2 + $0x180] sm:$0xff]  ;;  %v368_v18 = vld [vmem:[#allocation2 + $0x190] sm:$0xff]  ;;  %v363_v19 = vld [vmem:[#allocation2 + $0x168] sm:$0xff]  ;;  %s301_s28 = scalar_lea.vmem %s3659_s0, %s2527_s13 }
  0x49   : > { %v310_v2 = vld [vmem:[%s305_s19] sm:$0xff]  ;;  %478 = vmatpush1.msra.mxu1 %v376_v10  ;;  %408 = vmatprep.subr.mxu0 %v371_v11  ;;  %v365_v20 = vld [vmem:[#allocation2 + $0x178] sm:$0xff]  ;;  %v364_v22 = vld [vmem:[#allocation2 + $0x170] sm:$0xff]  ;;  %v309_v7 = vand.u32 127, %v308_v6  ;;  %s3605_s15 = scalar_lea.vmem [#allocation8], %s2816_s12  ;;  %p3678_p2 = scmp.ne.s32.totalorder %s3669_s7, 0 }
  0x4a   : > { %312 = vperm.xlu0 %2894, %v310_v2   ;;  %479 = vmatprep.subr.mxu1 %v373_v12  ;;  %v362_v21 = vld [vmem:[#allocation2 + $0x160] sm:$0xff]  ;;  %v359_v23 = vld [vmem:[#allocation2 + $0x148] sm:$0xff]  ;;  %v361_v24 = vld [vmem:[#allocation2 + $0x158] sm:$0xff]  ;;  %s2415_s18 = sshll.u32 %s3605_s15, 4  ;;  %s3400_s20 = smov [#allocation8]   ;;  %s2416_s18 = int_to_ptr.vmem [resolvable:$true] %s2415_s18 }
  0x4b   : > { %409 = vmatpush1.msra.mxu0 %v370_v13  ;;  %480 = vmatpush1.msra.mxu1 %v372_v14  ;;  %v358_v25 = vld [vmem:[#allocation2 + $0x140] sm:$0xff]  ;;  %v360_v26 = vld [vmem:[#allocation2 + $0x150] sm:$0xff]  ;;  %v355_v27 = vld [vmem:[#allocation2 + $0x128] sm:$0xff]  ;;  %s3321_s19 = scalar_lea.vmem %s2416_s18, 448  ;;  %s3325_s26 = sshll.u32 %s3400_s20, 4  ;;  %s3326_s26 = int_to_ptr.vmem [resolvable:$false] %s3325_s26 }
  0x4c   : > { %410 = vmatprep.subr.mxu0 %v367_v15  ;;  %481 = vmatprep.subr.mxu1 %v369_v16  ;;  %v357_v28 = vld [vmem:[#allocation2 + $0x138] sm:$0xff]  ;;  %v354_v29 = vld [vmem:[#allocation2 + $0x120] sm:$0xff]  ;;  %v356_v30 = vld [vmem:[#allocation2 + $0x130] sm:$0xff]  ;;  %p3322_p12 = scmp.ne.s32.totalorder %s2416_s18, %s3321_s19  ;;  %s3327_s25 = scalar_lea.vmem %s3326_s26, 896 }
  0x4d   : > { %411 = vmatpush1.msra.mxu0 %v366_v17  ;;  %482 = vmatpush1.msra.mxu1 %v368_v18  ;;  %v351_v31 = vld [vmem:[#allocation2 + $0x108] sm:$0xff]  ;;  %v353_v32 = vld [vmem:[#allocation2 + $0x118] sm:$0xff]  ;;  %v350_v33 = vld [vmem:[#allocation2 + $0x100] sm:$0xff]  ;;  %p3328_p4 = scmp.lt.s32.totalorder %s2416_s18, %s3326_s26  ;;  %p3329_p7 = scmp.lt.s32.totalorder %s3327_s25, %s3321_s19 }
  0x4e   : > { %412 = vmatprep.subr.mxu0 %v363_v19  ;;  %483 = vmatprep.subr.mxu1 %v365_v20  ;;  %v352_v34 = vld [vmem:[#allocation2 + $0x110] sm:$0xff]  ;;  %v347_v35 = vld [vmem:[#allocation2 + $0xe8] sm:$0xff]  ;;  %v349_v36 = vld [vmem:[#allocation2 + $0xf8] sm:$0xff]  ;;  %p3323_p9 = pnand %p3322_p12, %p3678_p2 }
  0x4f   : > { %413 = vmatpush1.msra.mxu0 %v362_v21  ;;  %484 = vmatpush1.msra.mxu1 %v364_v22  ;;  %v346_v37 = vld [vmem:[#allocation2 + $0xe0] sm:$0xff]  ;;  %v348_v38 = vld [vmem:[#allocation2 + $0xf0] sm:$0xff]  ;;  %v343_v39 = vld [vmem:[#allocation2 + $0xc8] sm:$0xff]  ;;  %p3330_p5 = por %p3329_p7, %p3328_p4 }
  0x50   : > { %414 = vmatprep.subr.mxu0 %v359_v23  ;;  %485 = vmatprep.subr.mxu1 %v361_v24  ;;  %v345_v40 = vld [vmem:[#allocation2 + $0xd8] sm:$0xff]  ;;  %v342_v41 = vld [vmem:[#allocation2 + $0xc0] sm:$0xff]  ;;  %v344_v42 = vld [vmem:[#allocation2 + $0xd0] sm:$0xff]  ;;  %p3324_p3 = pneg %p3323_p9 }
  0x51   : > { %415 = vmatpush1.msra.mxu0 %v358_v25  ;;  %486 = vmatpush1.msra.mxu1 %v360_v26  ;;  %v339_v43 = vld [vmem:[#allocation2 + $0xa8] sm:$0xff]  ;;  %v341_v44 = vld [vmem:[#allocation2 + $0xb8] sm:$0xff]  ;;  %v338_v45 = vld [vmem:[#allocation2 + $0xa0] sm:$0xff] }
  0x52   : > { %416 = vmatprep.subr.mxu0 %v355_v27  ;;  %487 = vmatprep.subr.mxu1 %v357_v28  ;;  %v340_v46 = vld [vmem:[#allocation2 + $0xb0] sm:$0xff]  ;;  %v335_v47 = vld [vmem:[#allocation2 + $0x88] sm:$0xff]  ;;  %v337_v48 = vld [vmem:[#allocation2 + $0x98] sm:$0xff]  ;;  %p3331_p6 = pnand %p3330_p5, %p3324_p3 }
  0x53   : > { %417 = vmatpush1.msra.mxu0 %v354_v29  ;;  %488 = vmatpush1.msra.mxu1 %v356_v30  ;;  %v334_v49 = vld [vmem:[#allocation2 + $0x80] sm:$0xff]  ;;  %v336_v50 = vld [vmem:[#allocation2 + $0x90] sm:$0xff]  ;;  %v331_v51 = vld [vmem:[#allocation2 + $0x68] sm:$0xff] }
  0x54   : > { %418 = vmatprep.subr.mxu0 %v351_v31  ;;  %489 = vmatprep.subr.mxu1 %v353_v32  ;;  %v333_v52 = vld [vmem:[#allocation2 + $0x78] sm:$0xff]  ;;  %v330_v53 = vld [vmem:[#allocation2 + $0x60] sm:$0xff]  ;;  %v332_v54 = vld [vmem:[#allocation2 + $0x70] sm:$0xff] }
  0x55   : > { %419 = vmatpush1.msra.mxu0 %v350_v33  ;;  %490 = vmatpush1.msra.mxu1 %v352_v34  ;;  %v327_v55 = vld [vmem:[#allocation2 + $0x48] sm:$0xff]  ;;  %v329_v56 = vld [vmem:[#allocation2 + $0x58] sm:$0xff]  ;;  %v326_v57 = vld [vmem:[#allocation2 + $0x40] sm:$0xff] }
  0x56   : > { %420 = vmatprep.subr.mxu0 %v347_v35  ;;  %491 = vmatprep.subr.mxu1 %v349_v36  ;;  %v328_v58 = vld [vmem:[#allocation2 + $0x50] sm:$0xff]  ;;  %v323_v59 = vld [vmem:[#allocation2 + $0x28] sm:$0xff]  ;;  %v325_v60 = vld [vmem:[#allocation2 + $0x38] sm:$0xff] }
  0x57   : > { %421 = vmatpush1.msra.mxu0 %v346_v37  ;;  %492 = vmatpush1.msra.mxu1 %v348_v38  ;;  %v322_v61 = vld [vmem:[#allocation2 + $0x20] sm:$0xff]  ;;  %v324_v62 = vld [vmem:[#allocation2 + $0x30] sm:$0xff]  ;;  %v319_v63 = vld [vmem:[#allocation2 + $0x8] sm:$0xff] }
  0x58   : > { %422 = vmatprep.subr.mxu0 %v343_v39  ;;  %493 = vmatprep.subr.mxu1 %v345_v40  ;;  %v321_v0 = vld [vmem:[#allocation2 + $0x18] sm:$0xff]  ;;  %v318_v2 = vld [vmem:[#allocation2] sm:$0xff]  ;;  %v320_v3 = vld [vmem:[#allocation2 + $0x10] sm:$0xff] }
  0x59   : > { %423 = vmatpush1.msra.mxu0 %v342_v41  ;;  %494 = vmatpush1.msra.mxu1 %v344_v42  ;;  %v2897_v4 = vld [vmem:[#allocation7 + $0x18c] ss:$28 sps:$4 sm:$0xff]   ;;  %v307_v8 = vld [vmem:[%s301_s28] sm:$0xff]  ;;  %v2903_v14 = vld [vmem:[#allocation7 + $0x154] ss:$28 sps:$4 sm:$0xff]  }
  0x5a   : > { %424 = vmatprep.subr.mxu0 %v339_v43  ;;  %495 = vmatprep.subr.mxu1 %v341_v44  ;;  %v2900_v5 = vld [vmem:[#allocation7 + $0x50c] ss:$28 sps:$4 sm:$0xff]   ;;  %v2906_v15 = vld [vmem:[#allocation7 + $0x4d4] ss:$28 sps:$4 sm:$0xff]   ;;  %v2909_v18 = vld [vmem:[#allocation7 + $0x11c] ss:$28 sps:$4 sm:$0xff]  }
  0x5b   : > { %425 = vmatpush1.msra.mxu0 %v338_v45  ;;  %496 = vmatpush1.msra.mxu1 %v340_v46  ;;  %v2895_v10 = vld [vmem:[#allocation7 + $0x188] ss:$28 sps:$4 sm:$0xff]   ;;  %v2901_v16 = vld [vmem:[#allocation7 + $0x150] ss:$28 sps:$4 sm:$0xff]   ;;  %v2912_v19 = vld [vmem:[#allocation7 + $0x49c] ss:$28 sps:$4 sm:$0xff]  }
  0x5c   : > { %426 = vmatprep.subr.mxu0 %v335_v47  ;;  %497 = vmatprep.subr.mxu1 %v337_v48  ;;  %v2898_v12 = vld [vmem:[#allocation7 + $0x508] ss:$28 sps:$4 sm:$0xff]   ;;  %v2904_v17 = vld [vmem:[#allocation7 + $0x4d0] ss:$28 sps:$4 sm:$0xff]   ;;  %v2907_v20 = vld [vmem:[#allocation7 + $0x118] ss:$28 sps:$4 sm:$0xff]  }
  0x5d   : > { %427 = vmatpush1.msra.mxu0 %v334_v49  ;;  %498 = vmatpush1.msra.mxu1 %v336_v50  ;;  %v2910_v21 = vld [vmem:[#allocation7 + $0x498] ss:$28 sps:$4 sm:$0xff]   ;;  %v2918_v22 = vld [vmem:[#allocation7 + $0x464] ss:$28 sps:$4 sm:$0xff]   ;;  %v2921_v25 = vld [vmem:[#allocation7 + $0xac] ss:$28 sps:$4 sm:$0xff]  }
  0x5e   : > { %428 = vmatprep.subr.mxu0 %v331_v51  ;;  %499 = vmatprep.subr.mxu1 %v333_v52  ;;  %v2913_v23 = vld [vmem:[#allocation7 + $0xe0] ss:$28 sps:$4 sm:$0xff]   ;;  %v2924_v26 = vld [vmem:[#allocation7 + $0x42c] ss:$28 sps:$4 sm:$0xff]   ;;  %v2927_v29 = vld [vmem:[#allocation7 + $0x74] ss:$28 sps:$4 sm:$0xff]  }
  0x5f   : > { %429 = vmatpush1.msra.mxu0 %v330_v53  ;;  %500 = vmatpush1.msra.mxu1 %v332_v54  ;;  %v2916_v24 = vld [vmem:[#allocation7 + $0x460] ss:$28 sps:$4 sm:$0xff]   ;;  %v2919_v27 = vld [vmem:[#allocation7 + $0xa8] ss:$28 sps:$4 sm:$0xff]   ;;  %v2930_v30 = vld [vmem:[#allocation7 + $0x3f4] ss:$28 sps:$4 sm:$0xff]  }
  0x60   : > { %430 = vmatprep.subr.mxu0 %v327_v55  ;;  %501 = vmatprep.subr.mxu1 %v329_v56  ;;  %v2922_v28 = vld [vmem:[#allocation7 + $0x428] ss:$28 sps:$4 sm:$0xff]   ;;  %v2925_v31 = vld [vmem:[#allocation7 + $0x70] ss:$28 sps:$4 sm:$0xff]   ;;  %v2933_v33 = vld [vmem:[#allocation7 + $0x3c] ss:$28 sps:$4 sm:$0xff]  }
  0x61   : > { %431 = vmatpush1.msra.mxu0 %v326_v57  ;;  %502 = vmatpush1.msra.mxu1 %v328_v58  ;;  %v2928_v32 = vld [vmem:[#allocation7 + $0x3f0] ss:$28 sps:$4 sm:$0xff]   ;;  %v2936_v34 = vld [vmem:[#allocation7 + $0x3bc] ss:$28 sps:$4 sm:$0xff]   ;;  %v2939_v37 = vld [vmem:[#allocation7 + $0x4] ss:$28 sps:$4 sm:$0xff]  }
  0x62   : > { %432 = vmatprep.subr.mxu0 %v323_v59  ;;  %503 = vmatprep.subr.mxu1 %v325_v60  ;;  %v2931_v35 = vld [vmem:[#allocation7 + $0x38] ss:$28 sps:$4 sm:$0xff]   ;;  %v2942_v38 = vld [vmem:[#allocation7 + $0x384] ss:$28 sps:$4 sm:$0xff]   ;;  %v2945_v41 = vld [vmem:[#allocation7 + $0x34c] ss:$28 sps:$4 sm:$0xff]  }
  0x63   : > { %433 = vmatpush1.msra.mxu0 %v322_v61  ;;  %504 = vmatpush1.msra.mxu1 %v324_v62  ;;  %v2934_v36 = vld [vmem:[#allocation7 + $0x3b8] ss:$28 sps:$4 sm:$0xff]   ;;  %v2937_v39 = vld [vmem:[#allocation7] ss:$28 sps:$4 sm:$0xff]   ;;  %v2948_v42 = vld [vmem:[#allocation7 + $0x6cc] ss:$28 sps:$4 sm:$0xff]  }
  0x64   : > { %434 = vmatprep.subr.mxu0 %v319_v63  ;;  %505 = vmatprep.subr.mxu1 %v321_v0  ;;  %v2940_v40 = vld [vmem:[#allocation7 + $0x380] ss:$28 sps:$4 sm:$0xff]   ;;  %v2943_v43 = vld [vmem:[#allocation7 + $0x348] ss:$28 sps:$4 sm:$0xff]   ;;  %v2951_v45 = vld [vmem:[#allocation7 + $0x314] ss:$28 sps:$4 sm:$0xff]  }
  0x65   : > { %435 = vmatpush1.msra.mxu0 %v318_v2  ;;  %506 = vmatpush1.msra.mxu1 %v320_v3  ;;  %v2946_v44 = vld [vmem:[#allocation7 + $0x6c8] ss:$28 sps:$4 sm:$0xff]   ;;  %v2954_v46 = vld [vmem:[#allocation7 + $0x694] ss:$28 sps:$4 sm:$0xff]   ;;  %v2957_v49 = vld [vmem:[#allocation7 + $0x2dc] ss:$28 sps:$4 sm:$0xff]  }
  0x66   : > { %1999 = vmatprep.subr.bf16.mxu0 %v2897_v4  ;;  %2040 = vmatprep.subr.bf16.mxu1 %v2900_v5  ;;  %v2949_v47 = vld [vmem:[#allocation7 + $0x310] ss:$28 sps:$4 sm:$0xff]   ;;  %v2960_v50 = vld [vmem:[#allocation7 + $0x65c] ss:$28 sps:$4 sm:$0xff]   ;;  %v2963_v53 = vld [vmem:[#allocation7 + $0x2a4] ss:$28 sps:$4 sm:$0xff]  }
  0x67   : > { %v2952_v48 = vld [vmem:[#allocation7 + $0x690] ss:$28 sps:$4 sm:$0xff]   ;;  %v2955_v51 = vld [vmem:[#allocation7 + $0x2d8] ss:$28 sps:$4 sm:$0xff]   ;;  %v2966_v54 = vld [vmem:[#allocation7 + $0x624] ss:$28 sps:$4 sm:$0xff]  }
  0x68   : > { %v2958_v52 = vld [vmem:[#allocation7 + $0x658] ss:$28 sps:$4 sm:$0xff]   ;;  %v2961_v55 = vld [vmem:[#allocation7 + $0x2a0] ss:$28 sps:$4 sm:$0xff]   ;;  %v2969_v57 = vld [vmem:[#allocation7 + $0x26c] ss:$28 sps:$4 sm:$0xff]  }
  0x69   : > { %v2964_v56 = vld [vmem:[#allocation7 + $0x620] ss:$28 sps:$4 sm:$0xff]   ;;  %v2972_v58 = vld [vmem:[#allocation7 + $0x5ec] ss:$28 sps:$4 sm:$0xff]   ;;  %v2975_v61 = vld [vmem:[#allocation7 + $0x234] ss:$28 sps:$4 sm:$0xff]  }
  0x6a   : > { %v2967_v59 = vld [vmem:[#allocation7 + $0x268] ss:$28 sps:$4 sm:$0xff]   ;;  %v2978_v62 = vld [vmem:[#allocation7 + $0x5b4] ss:$28 sps:$4 sm:$0xff]   ;;  %v2981_v2 = vld [vmem:[#allocation7 + $0x1fc] ss:$28 sps:$4 sm:$0xff]  }
  0x6b   : > { %v2970_v60 = vld [vmem:[#allocation7 + $0x5e8] ss:$28 sps:$4 sm:$0xff]   ;;  %v2973_v63 = vld [vmem:[#allocation7 + $0x230] ss:$28 sps:$4 sm:$0xff]   ;;  %v2984_v3 = vld [vmem:[#allocation7 + $0x57c] ss:$28 sps:$4 sm:$0xff]  }
  0x6c   : > { %v2976_v0 = vld [vmem:[#allocation7 + $0x5b0] ss:$28 sps:$4 sm:$0xff]   ;;  %v2979_v4 = vld [vmem:[#allocation7 + $0x1f8] ss:$28 sps:$4 sm:$0xff]  }
  0x6d   : > { %v2982_v5 = vld [vmem:[#allocation7 + $0x578] ss:$28 sps:$4 sm:$0xff]  }
  0xc5   : > { %v313_v9 = vpop.permute.xlu0 %312 }
  0xc6   : > { %vm314_vm0 = vcmp.eq.s32.totalorder %v309_v7, %v313_v9  ;;  %v2987_v7 = vld [vmem:[#allocation7 + $0x1c4] ss:$28 sps:$4 sm:$0xff]  }
  0xc7   : > { %v2529_v11 = vsel %vm314_vm0, 1.0, %v3399_v1  ;;  %v2915_v1 = vld [vmem:[#allocation7 + $0xe4] ss:$28 sps:$4 sm:$0xff]  }
  0xc8   : > { %v317_v13 = vadd.f32 %v2529_v11, %v307_v8  ;;  %v2990_v8 = vld [vmem:[#allocation7 + $0x544] ss:$28 sps:$4 sm:$0xff]   ;;  %v2993_v11 = vld [vmem:[#allocation7 + $0x194] ss:$28 sps:$4 sm:$0xff]  }
  0xc9   : > { %v2985_v9 = vld [vmem:[#allocation7 + $0x1c0] ss:$28 sps:$4 sm:$0xff]  }
  0xca   : > { %469 = vmatmul.mubr.f32.vlgmr.msra.gmra.mxu0 %v317_v13  ;;  %540 = vmatmul.mubr.f32.vlgmr.msra.gmra.mxu1 %v317_v13  ;;  %v3553_v13 = vshrl.u32 %v308_v6, 7 }
  0xcb   : > { %2000 = vmatpush1.bf16.msra.mxu0 %v2895_v10  ;;  %2041 = vmatpush1.bf16.msra.mxu1 %v2898_v12  ;;  %v2988_v10 = vld [vmem:[#allocation7 + $0x540] ss:$28 sps:$4 sm:$0xff]   ;;  %v2996_v12 = vld [vmem:[#allocation7 + $0x514] ss:$28 sps:$4 sm:$0xff]  }
  0xcc   : > { %2001 = vmatprep.subr.bf16.mxu0 %v2903_v14  ;;  %2042 = vmatprep.subr.bf16.mxu1 %v2906_v15  ;;  %v386_v14 = vsub.s32 0, %v3553_v13  ;;  %v394_v15 = vsub.s32 2, %v3553_v13 }
  0xcf   : > { %2002 = vmatpush1.bf16.msra.mxu0 %v2901_v16  ;;  %2043 = vmatpush1.bf16.msra.mxu1 %v2904_v17  ;;  %v382_v16 = vld [vmem:[#allocation5] sm:$0xf]  ;;  %v390_v17 = vsub.s32 1, %v3553_v13 }
  0xd0   : > { %2003 = vmatprep.subr.bf16.mxu0 %v2909_v18  ;;  %2044 = vmatprep.subr.bf16.mxu1 %v2912_v19  ;;  %v398_v18 = vsub.s32 3, %v3553_v13  ;;  %v387_v19 = vrot.slane %v382_v16, %v386_v14 }
  0xd2   : > { %v399_v6 = vrot.slane %v382_v16, %v398_v18 }
  0xd3   : > { %2004 = vmatpush1.bf16.msra.mxu0 %v2907_v20  ;;  %2045 = vmatpush1.bf16.msra.mxu1 %v2910_v21  ;;  %v395_v20 = vrot.slane %v382_v16, %v394_v15  ;;  %v391_v21 = vrot.slane %v382_v16, %v390_v17  ;;  %v3053_v16 = vld [vmem:[#allocation7 + $0x2e4] ss:$28 sps:$4 sm:$0xff]  }
  0xd4   : > { %2005 = vmatprep.subr.bf16.mxu0 %v2915_v1  ;;  %2046 = vmatprep.subr.bf16.mxu1 %v2918_v22 }
  0xd7   : > { %2006 = vmatpush1.bf16.msra.mxu0 %v2913_v23  ;;  %2047 = vmatpush1.bf16.msra.mxu1 %v2916_v24 }
  0xd8   : > { %2007 = vmatprep.subr.bf16.mxu0 %v2921_v25  ;;  %2048 = vmatprep.subr.bf16.mxu1 %v2924_v26 }
  0xdb   : > { %2008 = vmatpush1.bf16.msra.mxu0 %v2919_v27  ;;  %2049 = vmatpush1.bf16.msra.mxu1 %v2922_v28 }
  0xdc   : > { %2009 = vmatprep.subr.bf16.mxu0 %v2927_v29  ;;  %2050 = vmatprep.subr.bf16.mxu1 %v2930_v30 }
  0xdf   : > { %2010 = vmatpush1.bf16.msra.mxu0 %v2925_v31  ;;  %2051 = vmatpush1.bf16.msra.mxu1 %v2928_v32 }
  0xe0   : > { %2011 = vmatprep.subr.bf16.mxu0 %v2933_v33  ;;  %2052 = vmatprep.subr.bf16.mxu1 %v2936_v34 }
  0xe3   : > { %2012 = vmatpush1.bf16.msra.mxu0 %v2931_v35  ;;  %2053 = vmatpush1.bf16.msra.mxu1 %v2934_v36  ;;  %v2991_v35 = vld [vmem:[#allocation7 + $0x190] ss:$28 sps:$4 sm:$0xff]  }
  0xe4   : > { %2013 = vmatprep.subr.bf16.mxu0 %v2939_v37  ;;  %2054 = vmatprep.subr.bf16.mxu1 %v2942_v38  ;;  %v2994_v36 = vld [vmem:[#allocation7 + $0x510] ss:$28 sps:$4 sm:$0xff]  }
  0xe7   : > { %2014 = vmatpush1.bf16.msra.mxu0 %v2937_v39  ;;  %2055 = vmatpush1.bf16.msra.mxu1 %v2940_v40  ;;  %v2999_v39 = vld [vmem:[#allocation7 + $0x15c] ss:$28 sps:$4 sm:$0xff]  }
  0xe8   : > { %2015 = vmatprep.subr.bf16.mxu0 %v2945_v41  ;;  %2056 = vmatprep.subr.bf16.mxu1 %v2948_v42  ;;  %v3002_v40 = vld [vmem:[#allocation7 + $0x4dc] ss:$28 sps:$4 sm:$0xff]  }
  0xe9   : > { %v2997_v41 = vld [vmem:[#allocation7 + $0x158] ss:$28 sps:$4 sm:$0xff]  }
  0xea   : > { %v3000_v42 = vld [vmem:[#allocation7 + $0x4d8] ss:$28 sps:$4 sm:$0xff]  }
  0xeb   : > { %2016 = vmatpush2.bf16.msra.mxu0 %v2943_v43  ;;  %2057 = vmatpush2.bf16.msra.mxu1 %v2946_v44  ;;  %v3005_v43 = vld [vmem:[#allocation7 + $0x124] ss:$28 sps:$4 sm:$0xff]  }
  0xec   : > { %2017 = vmatprep.subr.bf16.mxu0 %v2951_v45  ;;  %2058 = vmatprep.subr.bf16.mxu1 %v2954_v46  ;;  %v3008_v44 = vld [vmem:[#allocation7 + $0x4a4] ss:$28 sps:$4 sm:$0xff]  }
  0xed   : > { %v3003_v45 = vld [vmem:[#allocation7 + $0x120] ss:$28 sps:$4 sm:$0xff]  }
  0xee   : > { %v3006_v46 = vld [vmem:[#allocation7 + $0x4a0] ss:$28 sps:$4 sm:$0xff]  }
  0xef   : > { %2018 = vmatpush2.bf16.msra.mxu0 %v2949_v47  ;;  %2059 = vmatpush2.bf16.msra.mxu1 %v2952_v48  ;;  %v3011_v47 = vld [vmem:[#allocation7 + $0xec] ss:$28 sps:$4 sm:$0xff]  }
  0xf0   : > { %2019 = vmatprep.subr.bf16.mxu0 %v2957_v49  ;;  %2060 = vmatprep.subr.bf16.mxu1 %v2960_v50  ;;  %v3014_v48 = vld [vmem:[#allocation7 + $0x46c] ss:$28 sps:$4 sm:$0xff]  }
  0xf1   : > { %v3009_v49 = vld [vmem:[#allocation7 + $0xe8] ss:$28 sps:$4 sm:$0xff]  }
  0xf2   : > { %v3012_v50 = vld [vmem:[#allocation7 + $0x468] ss:$28 sps:$4 sm:$0xff]  }
  0xf3   : > { %2020 = vmatpush2.bf16.msra.mxu0 %v2955_v51  ;;  %2061 = vmatpush2.bf16.msra.mxu1 %v2958_v52  ;;  %v3017_v51 = vld [vmem:[#allocation7 + $0xb4] ss:$28 sps:$4 sm:$0xff]  }
  0xf4   : > { %2021 = vmatprep.subr.bf16.mxu0 %v2963_v53  ;;  %2062 = vmatprep.subr.bf16.mxu1 %v2966_v54  ;;  %v3020_v52 = vld [vmem:[#allocation7 + $0x434] ss:$28 sps:$4 sm:$0xff]  }
  0xf5   : > { %v3015_v53 = vld [vmem:[#allocation7 + $0xb0] ss:$28 sps:$4 sm:$0xff]  }
  0xf6   : > { %v3018_v54 = vld [vmem:[#allocation7 + $0x430] ss:$28 sps:$4 sm:$0xff]  }
  0xf7   : > { %2022 = vmatpush2.bf16.msra.mxu0 %v2961_v55  ;;  %2063 = vmatpush2.bf16.msra.mxu1 %v2964_v56  ;;  %v3023_v55 = vld [vmem:[#allocation7 + $0x7c] ss:$28 sps:$4 sm:$0xff]  }
  0xf8   : > { %2023 = vmatprep.subr.bf16.mxu0 %v2969_v57  ;;  %2064 = vmatprep.subr.bf16.mxu1 %v2972_v58  ;;  %v3026_v56 = vld [vmem:[#allocation7 + $0x3fc] ss:$28 sps:$4 sm:$0xff]  }
  0xf9   : > { %v3021_v57 = vld [vmem:[#allocation7 + $0x78] ss:$28 sps:$4 sm:$0xff]  }
  0xfa   : > { %v3024_v58 = vld [vmem:[#allocation7 + $0x3f8] ss:$28 sps:$4 sm:$0xff]  }
  0xfb   : > { %2024 = vmatpush2.bf16.msra.mxu0 %v2967_v59  ;;  %2065 = vmatpush2.bf16.msra.mxu1 %v2970_v60  ;;  %v3029_v59 = vld [vmem:[#allocation7 + $0x44] ss:$28 sps:$4 sm:$0xff]  }
  0xfc   : > { %2025 = vmatprep.subr.bf16.mxu0 %v2975_v61  ;;  %2066 = vmatprep.subr.bf16.mxu1 %v2978_v62  ;;  %v3032_v60 = vld [vmem:[#allocation7 + $0x3c4] ss:$28 sps:$4 sm:$0xff]  }
  0xfd   : > { %v3027_v61 = vld [vmem:[#allocation7 + $0x40] ss:$28 sps:$4 sm:$0xff]  }
  0xfe   : > { %v3030_v62 = vld [vmem:[#allocation7 + $0x3c0] ss:$28 sps:$4 sm:$0xff]  }
  0xff   : > { %2026 = vmatpush2.bf16.msra.mxu0 %v2973_v63  ;;  %2067 = vmatpush2.bf16.msra.mxu1 %v2976_v0  ;;  %v3035_v63 = vld [vmem:[#allocation7 + $0xc] ss:$28 sps:$4 sm:$0xff]  }
 0x100   : > { %2027 = vmatprep.subr.bf16.mxu0 %v2981_v2  ;;  %2068 = vmatprep.subr.bf16.mxu1 %v2984_v3  ;;  %v3038_v0 = vld [vmem:[#allocation7 + $0x38c] ss:$28 sps:$4 sm:$0xff]  }
 0x101   : > { %v3033_v2 = vld [vmem:[#allocation7 + $0x8] ss:$28 sps:$4 sm:$0xff]  }
 0x102   : > { %v3036_v3 = vld [vmem:[#allocation7 + $0x388] ss:$28 sps:$4 sm:$0xff]  }
 0x103   : > { %2028 = vmatpush2.bf16.msra.mxu0 %v2979_v4  ;;  %2069 = vmatpush2.bf16.msra.mxu1 %v2982_v5  ;;  %v3041_v4 = vld [vmem:[#allocation7 + $0x354] ss:$28 sps:$4 sm:$0xff]  }
 0x104   : > { %2029 = vmatprep.subr.bf16.mxu0 %v2987_v7  ;;  %2070 = vmatprep.subr.bf16.mxu1 %v2990_v8  ;;  %v3044_v5 = vld [vmem:[#allocation7 + $0x6d4] ss:$28 sps:$4 sm:$0xff]  }
 0x105   : > { %v3039_v7 = vld [vmem:[#allocation7 + $0x350] ss:$28 sps:$4 sm:$0xff]  }
 0x106   : > { %v3042_v8 = vld [vmem:[#allocation7 + $0x6d0] ss:$28 sps:$4 sm:$0xff]  }
 0x107   : > { %2030 = vmatpush2.bf16.msra.mxu0 %v2985_v9  ;;  %2071 = vmatpush2.bf16.msra.mxu1 %v2988_v10  ;;  %v3047_v9 = vld [vmem:[#allocation7 + $0x31c] ss:$28 sps:$4 sm:$0xff]  }
 0x108   : > { %2081 = vmatprep.subr.bf16.mxu0 %v2993_v11  ;;  %2122 = vmatprep.subr.bf16.mxu1 %v2996_v12  ;;  %v3050_v10 = vld [vmem:[#allocation7 + $0x69c] ss:$28 sps:$4 sm:$0xff]  }
 0x109   : > { %v3045_v11 = vld [vmem:[#allocation7 + $0x318] ss:$28 sps:$4 sm:$0xff]  }
 0x10a   : > { %v3048_v12 = vld [vmem:[#allocation7 + $0x698] ss:$28 sps:$4 sm:$0xff]  }
 0x18a   : > { %v470_v1 = vpop.f32.mrf.mxu0  ;;  %v541_v22 = vpop.f32.mrf.mxu1 }
 0x18b   : > { %v471_v23 = vadd.f32 %v470_v1, %v387_v19  ;;  %v542_v24 = vadd.f32 %v541_v22, %v395_v20  ;;  %v3056_v19 = vld [vmem:[#allocation7 + $0x664] ss:$28 sps:$4 sm:$0xff]   ;;  %v3062_v1 = vld [vmem:[#allocation7 + $0x62c] ss:$28 sps:$4 sm:$0xff]  }
 0x18c   : > { %v472_v25 = vpop.f32.mrf.mxu0  ;;  %v543_v26 = vpop.f32.mrf.mxu1  ;;  %v3051_v20 = vld [vmem:[#allocation7 + $0x2e0] ss:$28 sps:$4 sm:$0xff]   ;;  %v3057_v22 = vld [vmem:[#allocation7 + $0x2a8] ss:$28 sps:$4 sm:$0xff]  }
 0x18d   : > { %v473_v27 = vadd.f32 %v472_v25, %v391_v21  ;;  %v544_v28 = vadd.f32 %v543_v26, %v399_v6  ;;  %v546_v29 = vmax.f32 %v471_v23, 0.0  ;;  %v548_v30 = vmax.f32 %v542_v24, 0.0  ;;  %v3054_v21 = vld [vmem:[#allocation7 + $0x660] ss:$28 sps:$4 sm:$0xff]   ;;  %v3059_v6 = vld [vmem:[#allocation7 + $0x2ac] ss:$28 sps:$4 sm:$0xff]  }
 0x18e   : > { %v3060_v23 = vld [vmem:[#allocation7 + $0x628] ss:$28 sps:$4 sm:$0xff]   ;;  %v3065_v24 = vld [vmem:[#allocation7 + $0x274] ss:$28 sps:$4 sm:$0xff]  }
 0x18f   : > { %v547_v31 = vmax.f32 %v473_v27, 0.0  ;;  %v549_v32 = vmax.f32 %v544_v28, 0.0  ;;  %v3571_v37 = vpack.c.bf16 %v546_v29, %v546_v29  ;;  %v3573_v38 = vpack.c.bf16 %v548_v30, %v548_v30  ;;  %v3068_v25 = vld [vmem:[#allocation7 + $0x5f4] ss:$28 sps:$4 sm:$0xff]   ;;  %v3071_v28 = vld [vmem:[#allocation7 + $0x23c] ss:$28 sps:$4 sm:$0xff]  }
 0x190   : > { %v3063_v26 = vld [vmem:[#allocation7 + $0x270] ss:$28 sps:$4 sm:$0xff]   ;;  %v3074_v29 = vld [vmem:[#allocation7 + $0x5bc] ss:$28 sps:$4 sm:$0xff]  }
 0x191   : > { %v3567_v33 = vpack.c.bf16 %v547_v31, %v547_v31  ;;  %v3569_v34 = vpack.c.bf16 %v549_v32, %v549_v32  ;;  %v3066_v27 = vld [vmem:[#allocation7 + $0x5f0] ss:$28 sps:$4 sm:$0xff]   ;;  %v3069_v30 = vld [vmem:[#allocation7 + $0x238] ss:$28 sps:$4 sm:$0xff]   ;;  %v3077_v32 = vld [vmem:[#allocation7 + $0x204] ss:$28 sps:$4 sm:$0xff]  }
 0x192   : > { %v3072_v31 = vld [vmem:[#allocation7 + $0x5b8] ss:$28 sps:$4 sm:$0xff]  }
 0x193   : > { %2031 = vmatprep.mubr.bf16.mxu0 %v3567_v33  ;;  %2072 = vmatprep.mubr.bf16.mxu1 %v3569_v34 }
 0x194   : > { %2032 = vmatmul.mubr.bf16.vlgmr.msra.gmra.mxu0 %v3571_v37  ;;  %2073 = vmatmul.mubr.bf16.vlgmr.msra.gmra.mxu1 %v3573_v38 }
 0x195   : > { %2082 = vmatpush1.bf16.msra.mxu0 %v2991_v35  ;;  %2123 = vmatpush1.bf16.msra.mxu1 %v2994_v36  ;;  %v3080_v35 = vld [vmem:[#allocation7 + $0x584] ss:$28 sps:$4 sm:$0xff]  }
 0x196   : > { %2113 = vmatprep.mubr.bf16.mxu0 %v3567_v33  ;;  %2154 = vmatprep.mubr.bf16.mxu1 %v3569_v34  ;;  %v3075_v36 = vld [vmem:[#allocation7 + $0x200] ss:$28 sps:$4 sm:$0xff]  }
 0x197   : > { %2083 = vmatprep.subr.bf16.mxu0 %v2999_v39  ;;  %2124 = vmatprep.subr.bf16.mxu1 %v3002_v40  ;;  %v3078_v39 = vld [vmem:[#allocation7 + $0x580] ss:$28 sps:$4 sm:$0xff]   ;;  %v3083_v40 = vld [vmem:[#allocation7 + $0x1cc] ss:$28 sps:$4 sm:$0xff]  }
 0x199   : > { %2084 = vmatpush1.bf16.msra.mxu0 %v2997_v41  ;;  %2125 = vmatpush1.bf16.msra.mxu1 %v3000_v42  ;;  %v3086_v41 = vld [vmem:[#allocation7 + $0x54c] ss:$28 sps:$4 sm:$0xff]  }
 0x19a   : > { %2085 = vmatprep.subr.bf16.mxu0 %v3005_v43  ;;  %2126 = vmatprep.subr.bf16.mxu1 %v3008_v44  ;;  %v3081_v42 = vld [vmem:[#allocation7 + $0x1c8] ss:$28 sps:$4 sm:$0xff]   ;;  %v3089_v44 = vld [vmem:[#allocation7 + $0x19c] ss:$28 sps:$4 sm:$0xff]  }
 0x19b   : > { %v3084_v43 = vld [vmem:[#allocation7 + $0x548] ss:$28 sps:$4 sm:$0xff]  }
 0x19d   : > { %2086 = vmatpush1.bf16.msra.mxu0 %v3003_v45  ;;  %2127 = vmatpush1.bf16.msra.mxu1 %v3006_v46  ;;  %v3092_v45 = vld [vmem:[#allocation7 + $0x51c] ss:$28 sps:$4 sm:$0xff]  }
 0x19e   : > { %2087 = vmatprep.subr.bf16.mxu0 %v3011_v47  ;;  %2128 = vmatprep.subr.bf16.mxu1 %v3014_v48  ;;  %v3087_v46 = vld [vmem:[#allocation7 + $0x198] ss:$28 sps:$4 sm:$0xff]   ;;  %v3095_v48 = vld [vmem:[#allocation7 + $0x164] ss:$28 sps:$4 sm:$0xff]  }
 0x19f   : > { %v3090_v47 = vld [vmem:[#allocation7 + $0x518] ss:$28 sps:$4 sm:$0xff]  }
 0x1a1   : > { %2088 = vmatpush1.bf16.msra.mxu0 %v3009_v49  ;;  %2129 = vmatpush1.bf16.msra.mxu1 %v3012_v50  ;;  %v3098_v49 = vld [vmem:[#allocation7 + $0x4e4] ss:$28 sps:$4 sm:$0xff]  }
 0x1a2   : > { %2089 = vmatprep.subr.bf16.mxu0 %v3017_v51  ;;  %2130 = vmatprep.subr.bf16.mxu1 %v3020_v52  ;;  %v3093_v50 = vld [vmem:[#allocation7 + $0x160] ss:$28 sps:$4 sm:$0xff]   ;;  %v3101_v52 = vld [vmem:[#allocation7 + $0x12c] ss:$28 sps:$4 sm:$0xff]  }
 0x1a3   : > { %v3096_v51 = vld [vmem:[#allocation7 + $0x4e0] ss:$28 sps:$4 sm:$0xff]  }
 0x1a5   : > { %2090 = vmatpush1.bf16.msra.mxu0 %v3015_v53  ;;  %2131 = vmatpush1.bf16.msra.mxu1 %v3018_v54  ;;  %v3104_v53 = vld [vmem:[#allocation7 + $0x4ac] ss:$28 sps:$4 sm:$0xff]  }
 0x1a6   : > { %2091 = vmatprep.subr.bf16.mxu0 %v3023_v55  ;;  %2132 = vmatprep.subr.bf16.mxu1 %v3026_v56  ;;  %v3099_v54 = vld [vmem:[#allocation7 + $0x128] ss:$28 sps:$4 sm:$0xff]   ;;  %v3107_v56 = vld [vmem:[#allocation7 + $0xf4] ss:$28 sps:$4 sm:$0xff]  }
 0x1a7   : > { %v3102_v55 = vld [vmem:[#allocation7 + $0x4a8] ss:$28 sps:$4 sm:$0xff]  }
 0x1a9   : > { %2092 = vmatpush1.bf16.msra.mxu0 %v3021_v57  ;;  %2133 = vmatpush1.bf16.msra.mxu1 %v3024_v58  ;;  %v3110_v57 = vld [vmem:[#allocation7 + $0x474] ss:$28 sps:$4 sm:$0xff]  }
 0x1aa   : > { %2093 = vmatprep.subr.bf16.mxu0 %v3029_v59  ;;  %2134 = vmatprep.subr.bf16.mxu1 %v3032_v60  ;;  %v3105_v58 = vld [vmem:[#allocation7 + $0xf0] ss:$28 sps:$4 sm:$0xff]   ;;  %v3113_v60 = vld [vmem:[#allocation7 + $0xbc] ss:$28 sps:$4 sm:$0xff]  }
 0x1ab   : > { %v3108_v59 = vld [vmem:[#allocation7 + $0x470] ss:$28 sps:$4 sm:$0xff]  }
 0x1ad   : > { %2094 = vmatpush1.bf16.msra.mxu0 %v3027_v61  ;;  %2135 = vmatpush1.bf16.msra.mxu1 %v3030_v62  ;;  %v3116_v61 = vld [vmem:[#allocation7 + $0x43c] ss:$28 sps:$4 sm:$0xff]  }
 0x1ae   : > { %2095 = vmatprep.subr.bf16.mxu0 %v3035_v63  ;;  %2136 = vmatprep.subr.bf16.mxu1 %v3038_v0  ;;  %v3111_v62 = vld [vmem:[#allocation7 + $0xb8] ss:$28 sps:$4 sm:$0xff]   ;;  %v3119_v0 = vld [vmem:[#allocation7 + $0x84] ss:$28 sps:$4 sm:$0xff]  }
 0x1af   : > { %v3114_v63 = vld [vmem:[#allocation7 + $0x438] ss:$28 sps:$4 sm:$0xff]  }
 0x1b1   : > { %2096 = vmatpush1.bf16.msra.mxu0 %v3033_v2  ;;  %2137 = vmatpush1.bf16.msra.mxu1 %v3036_v3  ;;  %v3122_v2 = vld [vmem:[#allocation7 + $0x404] ss:$28 sps:$4 sm:$0xff]  }
 0x1b2   : > { %2097 = vmatprep.subr.bf16.mxu0 %v3041_v4  ;;  %2138 = vmatprep.subr.bf16.mxu1 %v3044_v5  ;;  %v3117_v3 = vld [vmem:[#allocation7 + $0x80] ss:$28 sps:$4 sm:$0xff]   ;;  %v3125_v5 = vld [vmem:[#allocation7 + $0x4c] ss:$28 sps:$4 sm:$0xff]  }
 0x1b3   : > { %v3120_v4 = vld [vmem:[#allocation7 + $0x400] ss:$28 sps:$4 sm:$0xff]  }
 0x1b5   : > { %2098 = vmatpush2.bf16.msra.mxu0 %v3039_v7  ;;  %2139 = vmatpush2.bf16.msra.mxu1 %v3042_v8  ;;  %v3128_v7 = vld [vmem:[#allocation7 + $0x3cc] ss:$28 sps:$4 sm:$0xff]  }
 0x1b6   : > { %2099 = vmatprep.subr.bf16.mxu0 %v3047_v9  ;;  %2140 = vmatprep.subr.bf16.mxu1 %v3050_v10  ;;  %v3123_v8 = vld [vmem:[#allocation7 + $0x48] ss:$28 sps:$4 sm:$0xff]   ;;  %v3131_v10 = vld [vmem:[#allocation7 + $0x14] ss:$28 sps:$4 sm:$0xff]  }
 0x1b7   : > { %v3126_v9 = vld [vmem:[#allocation7 + $0x3c8] ss:$28 sps:$4 sm:$0xff]  }
 0x1b9   : > { %2100 = vmatpush2.bf16.msra.mxu0 %v3045_v11  ;;  %2141 = vmatpush2.bf16.msra.mxu1 %v3048_v12  ;;  %v3134_v11 = vld [vmem:[#allocation7 + $0x394] ss:$28 sps:$4 sm:$0xff]  }
 0x1ba   : > { %2101 = vmatprep.subr.bf16.mxu0 %v3053_v16  ;;  %2142 = vmatprep.subr.bf16.mxu1 %v3056_v19  ;;  %v3129_v12 = vld [vmem:[#allocation7 + $0x10] ss:$28 sps:$4 sm:$0xff]   ;;  %v3137_v19 = vld [vmem:[#allocation7 + $0x35c] ss:$28 sps:$4 sm:$0xff]  }
 0x1bb   : > { %v3132_v16 = vld [vmem:[#allocation7 + $0x390] ss:$28 sps:$4 sm:$0xff]  }
 0x1bd   : > { %2102 = vmatpush2.bf16.msra.mxu0 %v3051_v20  ;;  %2143 = vmatpush2.bf16.msra.mxu1 %v3054_v21  ;;  %v3140_v20 = vld [vmem:[#allocation7 + $0x6dc] ss:$28 sps:$4 sm:$0xff]  }
 0x1be   : > { %2103 = vmatprep.subr.bf16.mxu0 %v3059_v6  ;;  %2144 = vmatprep.subr.bf16.mxu1 %v3062_v1  ;;  %v3135_v21 = vld [vmem:[#allocation7 + $0x358] ss:$28 sps:$4 sm:$0xff]   ;;  %v3143_v1 = vld [vmem:[#allocation7 + $0x324] ss:$28 sps:$4 sm:$0xff]  }
 0x1bf   : > { %v3138_v6 = vld [vmem:[#allocation7 + $0x6d8] ss:$28 sps:$4 sm:$0xff]  }
 0x1c1   : > { %2104 = vmatpush2.bf16.msra.mxu0 %v3057_v22  ;;  %2145 = vmatpush2.bf16.msra.mxu1 %v3060_v23  ;;  %v3146_v22 = vld [vmem:[#allocation7 + $0x6a4] ss:$28 sps:$4 sm:$0xff]  }
 0x1c2   : > { %2105 = vmatprep.subr.bf16.mxu0 %v3065_v24  ;;  %2146 = vmatprep.subr.bf16.mxu1 %v3068_v25  ;;  %v3141_v23 = vld [vmem:[#allocation7 + $0x320] ss:$28 sps:$4 sm:$0xff]   ;;  %v3149_v25 = vld [vmem:[#allocation7 + $0x2ec] ss:$28 sps:$4 sm:$0xff]  }
 0x1c3   : > { %v3144_v24 = vld [vmem:[#allocation7 + $0x6a0] ss:$28 sps:$4 sm:$0xff]  }
 0x1c5   : > { %2106 = vmatpush2.bf16.msra.mxu0 %v3063_v26  ;;  %2147 = vmatpush2.bf16.msra.mxu1 %v3066_v27  ;;  %v3152_v26 = vld [vmem:[#allocation7 + $0x66c] ss:$28 sps:$4 sm:$0xff]  }
 0x1c6   : > { %2107 = vmatprep.subr.bf16.mxu0 %v3071_v28  ;;  %2148 = vmatprep.subr.bf16.mxu1 %v3074_v29  ;;  %v3147_v27 = vld [vmem:[#allocation7 + $0x2e8] ss:$28 sps:$4 sm:$0xff]   ;;  %v3155_v29 = vld [vmem:[#allocation7 + $0x2b4] ss:$28 sps:$4 sm:$0xff]  }
 0x1c7   : > { %v3150_v28 = vld [vmem:[#allocation7 + $0x668] ss:$28 sps:$4 sm:$0xff]  }
 0x1c9   : > { %2108 = vmatpush2.bf16.msra.mxu0 %v3069_v30  ;;  %2149 = vmatpush2.bf16.msra.mxu1 %v3072_v31  ;;  %v3158_v30 = vld [vmem:[#allocation7 + $0x634] ss:$28 sps:$4 sm:$0xff]  }
 0x1ca   : > { %2109 = vmatprep.subr.bf16.mxu0 %v3077_v32  ;;  %2150 = vmatprep.subr.bf16.mxu1 %v3080_v35  ;;  %v3153_v31 = vld [vmem:[#allocation7 + $0x2b0] ss:$28 sps:$4 sm:$0xff]   ;;  %v3161_v35 = vld [vmem:[#allocation7 + $0x27c] ss:$28 sps:$4 sm:$0xff]  }
 0x1cb   : > { %v3156_v32 = vld [vmem:[#allocation7 + $0x630] ss:$28 sps:$4 sm:$0xff]  }
 0x1cd   : > { %2110 = vmatpush2.bf16.msra.mxu0 %v3075_v36  ;;  %2151 = vmatpush2.bf16.msra.mxu1 %v3078_v39  ;;  %v3164_v36 = vld [vmem:[#allocation7 + $0x5fc] ss:$28 sps:$4 sm:$0xff]  }
 0x1ce   : > { %2111 = vmatprep.subr.bf16.mxu0 %v3083_v40  ;;  %2152 = vmatprep.subr.bf16.mxu1 %v3086_v41  ;;  %v3159_v39 = vld [vmem:[#allocation7 + $0x278] ss:$28 sps:$4 sm:$0xff]   ;;  %v3167_v41 = vld [vmem:[#allocation7 + $0x244] ss:$28 sps:$4 sm:$0xff]  }
 0x1cf   : > { %v3162_v40 = vld [vmem:[#allocation7 + $0x5f8] ss:$28 sps:$4 sm:$0xff]  }
 0x1d1   : > { %2112 = vmatpush2.bf16.msra.mxu0 %v3081_v42  ;;  %2153 = vmatpush2.bf16.msra.mxu1 %v3084_v43  ;;  %v3170_v42 = vld [vmem:[#allocation7 + $0x5c4] ss:$28 sps:$4 sm:$0xff]  }
 0x1d2   : > { %2163 = vmatprep.subr.bf16.mxu0 %v3089_v44  ;;  %2204 = vmatprep.subr.bf16.mxu1 %v3092_v45  ;;  %v3165_v43 = vld [vmem:[#allocation7 + $0x240] ss:$28 sps:$4 sm:$0xff]   ;;  %v3173_v45 = vld [vmem:[#allocation7 + $0x20c] ss:$28 sps:$4 sm:$0xff]  }
 0x1d3   : > { %v3168_v44 = vld [vmem:[#allocation7 + $0x5c0] ss:$28 sps:$4 sm:$0xff]  }
 0x1d4   : > { %2114 = vmatmul.mubr.bf16.vlgmr.msra.gmra.mxu0 %v3571_v37  ;;  %2155 = vmatmul.mubr.bf16.vlgmr.msra.gmra.mxu1 %v3573_v38 }
 0x1d5   : > { %2164 = vmatpush1.bf16.msra.mxu0 %v3087_v46  ;;  %2195 = vmatprep.mubr.bf16.mxu0 %v3567_v33  ;;  %v3176_v46 = vld [vmem:[#allocation7 + $0x58c] ss:$28 sps:$4 sm:$0xff]  }
 0x1d6   : > { %2205 = vmatpush1.bf16.msra.mxu1 %v3090_v47  ;;  %2236 = vmatprep.mubr.bf16.mxu1 %v3569_v34  ;;  %v3171_v47 = vld [vmem:[#allocation7 + $0x208] ss:$28 sps:$4 sm:$0xff]  }
 0x1d7   : > { %2165 = vmatprep.subr.bf16.mxu0 %v3095_v48  ;;  %2206 = vmatprep.subr.bf16.mxu1 %v3098_v49  ;;  %v3174_v48 = vld [vmem:[#allocation7 + $0x588] ss:$28 sps:$4 sm:$0xff]   ;;  %v3179_v49 = vld [vmem:[#allocation7 + $0x1d4] ss:$28 sps:$4 sm:$0xff]  }
 0x1d9   : > { %2166 = vmatpush1.bf16.msra.mxu0 %v3093_v50  ;;  %v3182_v50 = vld [vmem:[#allocation7 + $0x554] ss:$28 sps:$4 sm:$0xff]  }
 0x1da   : > { %2207 = vmatpush1.bf16.msra.mxu1 %v3096_v51  ;;  %2167 = vmatprep.subr.bf16.mxu0 %v3101_v52  ;;  %v3177_v51 = vld [vmem:[#allocation7 + $0x1d0] ss:$28 sps:$4 sm:$0xff]  }
 0x1db   : > { %2208 = vmatprep.subr.bf16.mxu1 %v3104_v53  ;;  %v3180_v52 = vld [vmem:[#allocation7 + $0x550] ss:$28 sps:$4 sm:$0xff]   ;;  %v3183_v53 = vld [vmem:[#allocation7 + $0x360] ss:$28 sps:$4 sm:$0xff]  }
 0x1dd   : > { %2168 = vmatpush1.bf16.msra.mxu0 %v3099_v54  ;;  %v3184_v54 = vld [vmem:[#allocation7 + $0x6e0] ss:$28 sps:$4 sm:$0xff]  }
 0x1de   : > { %2209 = vmatpush1.bf16.msra.mxu1 %v3102_v55  ;;  %2169 = vmatprep.subr.bf16.mxu0 %v3107_v56  ;;  %v3185_v55 = vld [vmem:[#allocation7 + $0x1a0] ss:$28 sps:$4 sm:$0xff]  }
 0x1df   : > { %2210 = vmatprep.subr.bf16.mxu1 %v3110_v57  ;;  %v3186_v56 = vld [vmem:[#allocation7 + $0x520] ss:$28 sps:$4 sm:$0xff]   ;;  %v3187_v57 = vld [vmem:[#allocation7 + $0x328] ss:$28 sps:$4 sm:$0xff]  }
 0x1e1   : > { %2170 = vmatpush1.bf16.msra.mxu0 %v3105_v58  ;;  %v3188_v58 = vld [vmem:[#allocation7 + $0x6a8] ss:$28 sps:$4 sm:$0xff]  }
 0x1e2   : > { %2211 = vmatpush1.bf16.msra.mxu1 %v3108_v59  ;;  %2171 = vmatprep.subr.bf16.mxu0 %v3113_v60  ;;  %v3189_v59 = vld [vmem:[#allocation7 + $0x168] ss:$28 sps:$4 sm:$0xff]  }
 0x1e3   : > { %2212 = vmatprep.subr.bf16.mxu1 %v3116_v61  ;;  %v3190_v60 = vld [vmem:[#allocation7 + $0x4e8] ss:$28 sps:$4 sm:$0xff]   ;;  %v3191_v61 = vld [vmem:[#allocation7 + $0x2f0] ss:$28 sps:$4 sm:$0xff]  }
 0x1e5   : > { %2172 = vmatpush1.bf16.msra.mxu0 %v3111_v62  ;;  %v3192_v62 = vld [vmem:[#allocation7 + $0x670] ss:$28 sps:$4 sm:$0xff]  }
 0x1e6   : > { %2213 = vmatpush1.bf16.msra.mxu1 %v3114_v63  ;;  %2173 = vmatprep.subr.bf16.mxu0 %v3119_v0  ;;  %v3193_v63 = vld [vmem:[#allocation7 + $0x130] ss:$28 sps:$4 sm:$0xff]  }
 0x1e7   : > { %2214 = vmatprep.subr.bf16.mxu1 %v3122_v2  ;;  %v3194_v0 = vld [vmem:[#allocation7 + $0x4b0] ss:$28 sps:$4 sm:$0xff]   ;;  %v3195_v2 = vld [vmem:[#allocation7 + $0x2b8] ss:$28 sps:$4 sm:$0xff]  }
 0x1e9   : > { %2174 = vmatpush1.bf16.msra.mxu0 %v3117_v3  ;;  %v3196_v3 = vld [vmem:[#allocation7 + $0x638] ss:$28 sps:$4 sm:$0xff]  }
 0x1ea   : > { %2215 = vmatpush1.bf16.msra.mxu1 %v3120_v4  ;;  %2175 = vmatprep.subr.bf16.mxu0 %v3125_v5  ;;  %v3197_v4 = vld [vmem:[#allocation7 + $0xf8] ss:$28 sps:$4 sm:$0xff]   ;;  %v3199_v5 = vld [vmem:[#allocation7 + $0x280] ss:$28 sps:$4 sm:$0xff]  }
 0x1eb   : > { %2216 = vmatprep.subr.bf16.mxu1 %v3128_v7  ;;  %v3200_v7 = vld [vmem:[#allocation7 + $0x600] ss:$28 sps:$4 sm:$0xff]  }
 0x1ed   : > { %2176 = vmatpush1.bf16.msra.mxu0 %v3123_v8  ;;  %v3202_v8 = vld [vmem:[#allocation7 + $0x440] ss:$28 sps:$4 sm:$0xff]  }
 0x1ee   : > { %2217 = vmatpush1.bf16.msra.mxu1 %v3126_v9  ;;  %2177 = vmatprep.subr.bf16.mxu0 %v3131_v10  ;;  %v3203_v9 = vld [vmem:[#allocation7 + $0x248] ss:$28 sps:$4 sm:$0xff]  }
 0x1ef   : > { %2218 = vmatprep.subr.bf16.mxu1 %v3134_v11  ;;  %v3204_v10 = vld [vmem:[#allocation7 + $0x5c8] ss:$28 sps:$4 sm:$0xff]  }
 0x1f0   : > { %v3205_v11 = vld [vmem:[#allocation7 + $0x88] ss:$28 sps:$4 sm:$0xff]  }
 0x1f1   : > { %2178 = vmatpush1.bf16.msra.mxu0 %v3129_v12  ;;  %v3206_v12 = vld [vmem:[#allocation7 + $0x408] ss:$28 sps:$4 sm:$0xff]  }
 0x1f2   : > { %2219 = vmatpush1.bf16.msra.mxu1 %v3132_v16  ;;  %2179 = vmatprep.subr.bf16.mxu0 %v3137_v19  ;;  %v3207_v16 = vld [vmem:[#allocation7 + $0x210] ss:$28 sps:$4 sm:$0xff]  }
 0x1f3   : > { %2220 = vmatprep.subr.bf16.mxu1 %v3140_v20  ;;  %v3208_v19 = vld [vmem:[#allocation7 + $0x590] ss:$28 sps:$4 sm:$0xff]  }
 0x1f4   : > { %v3209_v20 = vld [vmem:[#allocation7 + $0x50] ss:$28 sps:$4 sm:$0xff]  }
 0x1f5   : > { %2180 = vmatpush2.bf16.msra.mxu0 %v3135_v21  ;;  %v3210_v21 = vld [vmem:[#allocation7 + $0x3d0] ss:$28 sps:$4 sm:$0xff]  }
 0x1f6   : > { %2221 = vmatpush2.bf16.msra.mxu1 %v3138_v6  ;;  %2181 = vmatprep.subr.bf16.mxu0 %v3143_v1  ;;  %v3211_v6 = vld [vmem:[#allocation7 + $0x1d8] ss:$28 sps:$4 sm:$0xff]  }
 0x1f7   : > { %2222 = vmatprep.subr.bf16.mxu1 %v3146_v22  ;;  %v3212_v1 = vld [vmem:[#allocation7 + $0x558] ss:$28 sps:$4 sm:$0xff]  }
 0x1f8   : > { %v3213_v22 = vld [vmem:[#allocation7 + $0x18] ss:$28 sps:$4 sm:$0xff]  }
 0x1f9   : > { %2182 = vmatpush2.bf16.msra.mxu0 %v3141_v23  ;;  %v3214_v23 = vld [vmem:[#allocation7 + $0x398] ss:$28 sps:$4 sm:$0xff]  }
 0x1fa   : > { %2223 = vmatpush2.bf16.msra.mxu1 %v3144_v24  ;;  %2183 = vmatprep.subr.bf16.mxu0 %v3149_v25  ;;  %v3594_v24 = vld [vmem:[%s3664_s5] sm:$0xff] }
 0x1fb   : > { %2224 = vmatprep.subr.bf16.mxu1 %v3152_v26  ;;  %v815_v25 = vrot.slane %v3594_v24, %v386_v14  ;;  %v819_v26 = vrot.slane %v3594_v24, %v390_v17 }
 0x1fd   : > { %2184 = vmatpush2.bf16.msra.mxu0 %v3147_v27 }
 0x1fe   : > { %2225 = vmatpush2.bf16.msra.mxu1 %v3150_v28  ;;  %2185 = vmatprep.subr.bf16.mxu0 %v3155_v29 }
 0x1ff   : > { %2226 = vmatprep.subr.bf16.mxu1 %v3158_v30 }
 0x201   : > { %2186 = vmatpush2.bf16.msra.mxu0 %v3153_v31 }
 0x202   : > { %2227 = vmatpush2.bf16.msra.mxu1 %v3156_v32  ;;  %2187 = vmatprep.subr.bf16.mxu0 %v3161_v35 }
 0x203   : > { %2228 = vmatprep.subr.bf16.mxu1 %v3164_v36 }
 0x205   : > { %2188 = vmatpush2.bf16.msra.mxu0 %v3159_v39 }
 0x206   : > { %2229 = vmatpush2.bf16.msra.mxu1 %v3162_v40  ;;  %2189 = vmatprep.subr.bf16.mxu0 %v3167_v41 }
 0x207   : > { %2230 = vmatprep.subr.bf16.mxu1 %v3170_v42 }
 0x209   : > { %2190 = vmatpush2.bf16.msra.mxu0 %v3165_v43 }
 0x20a   : > { %2231 = vmatpush2.bf16.msra.mxu1 %v3168_v44  ;;  %2191 = vmatprep.subr.bf16.mxu0 %v3173_v45 }
 0x20b   : > { %2232 = vmatprep.subr.bf16.mxu1 %v3176_v46 }
 0x20d   : > { %2192 = vmatpush2.bf16.msra.mxu0 %v3171_v47 }
 0x20e   : > { %2233 = vmatpush2.bf16.msra.mxu1 %v3174_v48  ;;  %2193 = vmatprep.subr.bf16.mxu0 %v3179_v49  ;;  %v823_v48 = vrot.slane %v3594_v24, %v394_v15  ;;  %v827_v49 = vrot.slane %v3594_v24, %v398_v18 }
 0x20f   : > { %2234 = vmatprep.subr.bf16.mxu1 %v3182_v50 }
 0x211   : > { %2194 = vmatpush2.bf16.msra.mxu0 %v3177_v51 }
 0x212   : > { %2235 = vmatpush2.bf16.msra.mxu1 %v3180_v52  ;;  %2772 = vmatprep.subr.bf16.mxu0 %v3183_v53 }
 0x213   : > { %2794 = vmatprep.subr.bf16.mxu1 %v3184_v54 }
 0x214   : > { %2196 = vmatmul.mubr.bf16.vlgmr.msra.gmra.mxu0 %v3571_v37 }
 0x215   : > { %2237 = vmatmul.mubr.bf16.vlgmr.msra.gmra.mxu1 %v3573_v38  ;;  %2773 = vmatpush3.bf16.msra.mxu0 %v3185_v55 }
 0x216   : > { %2277 = vmatprep.mubr.bf16.mxu0 %v3567_v33  ;;  %2795 = vmatpush3.bf16.msra.mxu1 %v3186_v56  ;;  %v3198_v33 = vld [vmem:[#allocation7 + $0x478] ss:$28 sps:$4 sm:$0xff]  }
 0x217   : > { %2317 = vmatprep.mubr.bf16.mxu1 %v3569_v34  ;;  %2774 = vmatprep.subr.bf16.mxu0 %v3187_v57  ;;  %v3201_v34 = vld [vmem:[#allocation7 + $0xc0] ss:$28 sps:$4 sm:$0xff]  }
 0x218   : > { %2796 = vmatprep.subr.bf16.mxu1 %v3188_v58 }
 0x219   : > { %2775 = vmatpush3.bf16.msra.mxu0 %v3189_v59 }
 0x21a   : > { %2797 = vmatpush3.bf16.msra.mxu1 %v3190_v60  ;;  %2776 = vmatprep.subr.bf16.mxu0 %v3191_v61 }
 0x21b   : > { %2798 = vmatprep.subr.bf16.mxu1 %v3192_v62 }
 0x21d   : > { %2777 = vmatpush3.bf16.msra.mxu0 %v3193_v63 }
 0x21e   : > { %2799 = vmatpush3.bf16.msra.mxu1 %v3194_v0  ;;  %2778 = vmatprep.subr.bf16.mxu0 %v3195_v2 }
 0x21f   : > { %2800 = vmatprep.subr.bf16.mxu1 %v3196_v3 }
 0x221   : > { %2779 = vmatpush3.bf16.msra.mxu0 %v3197_v4 }
 0x222   : > { %2801 = vmatpush3.bf16.msra.mxu1 %v3198_v33  ;;  %2780 = vmatprep.subr.bf16.mxu0 %v3199_v5  ;;  %v830_v5 = vsub.s32 4, %v3553_v13 }
 0x223   : > { %2802 = vmatprep.subr.bf16.mxu1 %v3200_v7  ;;  %v834_v7 = vsub.s32 5, %v3553_v13 }
 0x225   : > { %2781 = vmatpush3.bf16.msra.mxu0 %v3201_v34  ;;  %v831_v34 = vrot.slane %v3594_v24, %v830_v5 }
 0x226   : > { %2803 = vmatpush3.bf16.msra.mxu1 %v3202_v8  ;;  %2782 = vmatprep.subr.bf16.mxu0 %v3203_v9  ;;  %v835_v8 = vrot.slane %v3594_v24, %v834_v7 }
 0x227   : > { %2804 = vmatprep.subr.bf16.mxu1 %v3204_v10 }
 0x229   : > { %2783 = vmatpush3.bf16.msra.mxu0 %v3205_v11 }
 0x22a   : > { %2805 = vmatpush3.bf16.msra.mxu1 %v3206_v12  ;;  %2784 = vmatprep.subr.bf16.mxu0 %v3207_v16 }
 0x22b   : > { %2806 = vmatprep.subr.bf16.mxu1 %v3208_v19 }
 0x22d   : > { %2785 = vmatpush3.bf16.msra.mxu0 %v3209_v20 }
 0x22e   : > { %2807 = vmatpush3.bf16.msra.mxu1 %v3210_v21  ;;  %2786 = vmatprep.subr.bf16.mxu0 %v3211_v6 }
 0x22f   : > { %2808 = vmatprep.subr.bf16.mxu1 %v3212_v1 }
 0x231   : > { %2787 = vmatpush3.bf16.msra.mxu0 %v3213_v22 }
 0x232   : > { %2809 = vmatpush3.bf16.msra.mxu1 %v3214_v23 }
 0x234   : > { %2278 = vmatmul.mubr.bf16.vlgmr.msra.gmra.mxu0 %v3571_v37 }
 0x235   : > { %2318 = vmatmul.mubr.bf16.vlgmr.msra.gmra.mxu1 %v3573_v38 }
 0x254   : > { %v2033_v27 = vpop.f32.mrf.mxu0  ;;  %v2074_v28 = vpop.f32.mrf.mxu1 }
 0x255   : > { %v2034_v29 = vadd.f32 %v2033_v27, %v815_v25 }
 0x256   : > { %v2035_v30 = vpop.f32.mrf.mxu0  ;;  %v2076_v37 = vpop.f32.mrf.mxu1 }
 0x257   : > { %v2075_v31 = vadd.f32 %v2074_v28, %v2034_v29  ;;  %v2036_v38 = vadd.f32 %v2035_v30, %v819_v26 }
 0x258   : > { %v2037_v32 = vpop.f32.mrf.mxu0  ;;  %v2078_v35 = vpop.f32.mrf.mxu1 }
 0x259   : > { %v2754_v36 = vmul.f32 -1.442695, %v2075_v31  ;;  %v2077_v39 = vadd.f32 %v2076_v37, %v2036_v38  ;;  %v838_v37 = vsub.s32 6, %v3553_v13 }
 0x25a   : > { %v2038_v40 = vpop.f32.mrf.mxu0  ;;  %v2079_v41 = vpop.f32.mrf.mxu1 }
 0x25b   : > { %3215 = vpow2.f32 %v2754_v36  ;;  %v2755_v14 = vmul.f32 -1.442695, %v2077_v39  ;;  %v839_v32 = vrot.slane %v3594_v24, %v838_v37 }
 0x25d   : > { %3217 = vpow2.f32 %v2755_v14 }
 0x268   : > { %v3216_v42 = vpop.eup %3215 }
 0x269   : > { %v2346_v17 = vadd.f32 1.0, %v3216_v42 }
 0x26a   : > { %v3218_v43 = vpop.eup %3217 }
 0x26b   : > { %v2347_v44 = vadd.f32 1.0, %v3218_v43  ;;  %3219 = vrcp.f32 %v2346_v17 }
 0x26d   : > { %3221 = vrcp.f32 %v2347_v44 }
 0x278   : > { %v3220_v45 = vpop.eup %3219 }
 0x27a   : > { %v3222_v46 = vpop.eup %3221 }
 0x27b   : > { %v2768_v47 = vpack.c.bf16 %v3222_v46, %v3220_v45 }
 0x27d   : > { %2396 = vst [vmem:[%s3605_s15] sm:$0xff] %v2768_v47 }
 0x294   : > { %v2115_v50 = vpop.f32.mrf.mxu0  ;;  %v2156_v51 = vpop.f32.mrf.mxu1 }
 0x295   : > { %v2116_v52 = vadd.f32 %v2115_v50, %v823_v48 }
 0x296   : > { %v2117_v53 = vpop.f32.mrf.mxu0  ;;  %v2158_v54 = vpop.f32.mrf.mxu1 }
 0x297   : > { %v2157_v55 = vadd.f32 %v2156_v51, %v2116_v52  ;;  %v2118_v56 = vadd.f32 %v2117_v53, %v827_v49 }
 0x298   : > { %v2119_v57 = vpop.f32.mrf.mxu0  ;;  %v2160_v58 = vpop.f32.mrf.mxu1 }
 0x299   : > { %v2756_v59 = vmul.f32 -1.442695, %v2157_v55  ;;  %v2159_v60 = vadd.f32 %v2158_v54, %v2118_v56 }
 0x29a   : > { %v2120_v61 = vpop.f32.mrf.mxu0  ;;  %v2161_v62 = vpop.f32.mrf.mxu1 }
 0x29b   : > { %3223 = vpow2.f32 %v2756_v59  ;;  %v2757_v15 = vmul.f32 -1.442695, %v2159_v60 }
 0x29d   : > { %3225 = vpow2.f32 %v2757_v15 }
 0x2a8   : > { %v3224_v63 = vpop.eup %3223 }
 0x2a9   : > { %v2348_v0 = vadd.f32 1.0, %v3224_v63 }
 0x2aa   : > { %v3226_v18 = vpop.eup %3225 }
 0x2ab   : > { %v2349_v2 = vadd.f32 1.0, %v3226_v18  ;;  %3227 = vrcp.f32 %v2348_v0 }
 0x2ad   : > { %3229 = vrcp.f32 %v2349_v2 }
 0x2b8   : > { %v3228_v3 = vpop.eup %3227 }
 0x2ba   : > { %v3230_v4 = vpop.eup %3229 }
 0x2bb   : > { %v2769_v33 = vpack.c.bf16 %v3230_v4, %v3228_v3 }
 0x2bd   : > { %2397 = vst [vmem:[%s3605_s15 + $0x8] sm:$0xff] %v2769_v33 }
 0x2d4   : > { %v2197_v9 = vpop.f32.mrf.mxu0 }
 0x2d5   : > { %v2198_v10 = vadd.f32 %v2197_v9, %v831_v34  ;;  %v2238_v11 = vpop.f32.mrf.mxu1 }
 0x2d6   : > { %v2199_v12 = vpop.f32.mrf.mxu0 }
 0x2d7   : > { %v2239_v16 = vadd.f32 %v2238_v11, %v2198_v10  ;;  %v2200_v19 = vadd.f32 %v2199_v12, %v835_v8  ;;  %v2240_v20 = vpop.f32.mrf.mxu1 }
 0x2d8   : > { %v2201_v21 = vpop.f32.mrf.mxu0 }
 0x2d9   : > { %v2758_v6 = vmul.f32 -1.442695, %v2239_v16  ;;  %v2241_v1 = vadd.f32 %v2240_v20, %v2200_v19  ;;  %v2242_v22 = vpop.f32.mrf.mxu1 }
 0x2da   : > { %v2202_v23 = vpop.f32.mrf.mxu0 }
 0x2db   : > { %3231 = vpow2.f32 %v2758_v6  ;;  %v2759_v25 = vmul.f32 -1.442695, %v2241_v1  ;;  %v2243_v26 = vpop.f32.mrf.mxu1 }
 0x2dd   : > { %3233 = vpow2.f32 %v2759_v25 }
 0x2e8   : > { %v3232_v27 = vpop.eup %3231 }
 0x2e9   : > { %v2350_v28 = vadd.f32 1.0, %v3232_v27 }
 0x2ea   : > { %v3234_v29 = vpop.eup %3233 }
 0x2eb   : > { %v2351_v30 = vadd.f32 1.0, %v3234_v29  ;;  %3235 = vrcp.f32 %v2350_v28 }
 0x2ed   : > { %3237 = vrcp.f32 %v2351_v30 }
 0x2f4   : > { %v2788_v31 = vpop.f32.mrf.mxu0 }
 0x2f5   : > { %v2810_v38 = vpop.f32.mrf.mxu1 }
 0x2f6   : > { %v2789_v35 = vpop.f32.mrf.mxu0 }
 0x2f7   : > { %v2790_v36 = vadd.f32 %v2789_v35, %v2788_v31  ;;  %v2811_v39 = vpop.f32.mrf.mxu1 }
 0x2f8   : > { %v2791_v40 = vpop.f32.mrf.mxu0  ;;  %v3236_v41 = vpop.eup %3235  ;;  %v2812_v42 = vadd.f32 %v2811_v39, %v2810_v38 }
 0x2f9   : > { %v2280_v14 = vadd.f32 %v2790_v36, %v839_v32  ;;  %v2813_v17 = vpop.f32.mrf.mxu1 }
 0x2fa   : > { %v3238_v43 = vpop.eup %3237  ;;  %v2792_v44 = vpop.f32.mrf.mxu0 }
 0x2fb   : > { %v2770_v45 = vpack.c.bf16 %v3238_v43, %v3236_v41  ;;  %v2320_v13 = vadd.f32 %v2812_v42, %v2280_v14  ;;  %v2814_v46 = vpop.f32.mrf.mxu1 }
 0x2fd   : > { %v2760_v47 = vmul.f32 -1.442695, %v2320_v13  ;;  %2398 = vst [vmem:[%s3605_s15 + $0x10] sm:$0xff] %v2770_v45 }
 0x2ff   : > { %3239 = vpow2.f32 %v2760_v47 }
 0x30c   : > { %v3240_v24 = vpop.eup %3239 }
 0x30d   : > { %v2352_v48 = vadd.f32 1.0, %v3240_v24 }
 0x30f   : > { %3241 = vrcp.f32 %v2352_v48 }
 0x31c   : > { %v3242_v49 = vpop.eup %3241 }
 0x31d   : > { %v2771_v50 = vpack.c.bf16 %v3242_v49, %v3242_v49 }
 0x31f   : > { %2399 = vst [vmem:[%s3605_s15 + $0x18] sm:$0xf] %v2771_v50 }
 0x320   : > { %3334 = shalt.err (!%p3331_p6)
}
 0x321   : > { %s3335_s28 = scalar_lea.hbm %s2413_s14, 448  ;;  %s3339_s11 = scalar_lea.hbm %s3665_s6, 896 }
 0x322   : > { %p3336_p10 = scmp.ne.s32.totalorder %s2413_s14, %s3335_s28  ;;  %p3340_p11 = scmp.lt.s32.totalorder %s2413_s14, %s3665_s6 }
 0x323   : > { %p3341_p0 = scmp.lt.s32.totalorder %s3339_s11, %s3335_s28 }
 0x324   : > { %p3337_p8 = pnand %p3336_p10, %p3678_p2 }
 0x325   : > { %p3342_p1 = por %p3341_p0, %p3340_p11 }
 0x326   : > { %p3338_p13 = pneg %p3337_p8 }
 0x328   : > { %p3343_p12 = pnand %p3342_p1, %p3338_p13 }
 0x32a   : > { %3346 = shalt.err (!%p3343_p12)
}
 0x32b   : > { %2830 = dma.vmem_to_hbm [thread:$0]  (%p3678_p2), %s2416_s18, 448, %s2413_s14, %s2401_s16  }
 0x32c PF: > { %p2852_p9 = scmp.ge.s32.totalorder %s3389_s24, 2  ;;  %s2427_s17 = sand.u32 1, %s3377_s21  }
 0x32d   : > { %p3679_p3 = scmp.ne.s32.totalorder %s3670_s8, 0  ;;  %s2428_s9 = scalar_lea.sflag [#allocation4], %s2427_s17 }
 0x32f   : > { %p2843_p4 = pnand %p2852_p9, %p3679_p3 }
 0x331   : > { %p2844_p7 = pneg %p2843_p4 }
 0x333   : > { %3372 = dma.done.wait (%p2844_p7), %s2428_s9, 448  }
 0x334   : > { %3374 = vsyncadd (%p2844_p7), %s2428_s9, 4294966848  ;;  %p18_p5 = scmp.ge.s32.totalorder %s3461_s27, 4   ;;  %s3680_s21 = smov %s3381_s22 }
 0x335   : > { %s3681_s22 = smov %s3385_s23  ;;  %s3682_s23 = smov %s3472_s30 }
 0x336   : > { %s3683_s24 = smov %s3461_s27  ;;  %20 = sbr.rel (!%p18_p5) target bundleno = 5 (0x5), region = 95 }
 0x33b   :  { %2433 = vsyncpa [#allocation3], 1 }
 0x33c   :  { %2435 = vsyncpa [#allocation3 + $0x1], 1 }
 0x33d   :  { %2436 = vsyncpa [#allocation6], 1 }
 0x33e   :  { %2437 = vsyncpa [#allocation4], 1 }
 0x33f   :  { %2439 = vsyncpa [#allocation4 + $0x1], 1 }

</bundles_post_ra>
